<compile_context>
chip_gen: v5e
topology: v5e:2x2
jax: 0.10.0
libtpu: 0.0.40
codegen_flags: <defaults>
</compile_context>

<pallas_src>
import functools

import jax
import jax.numpy as jnp
from jax.experimental import pallas as pl
from jax.experimental.pallas import tpu as pltpu


_VMEM_LIMIT = 48 * 1024 * 1024   # safe on v5e/v6e (128 MiB) and v7x (64 MiB)

# Demo cap so the small shapes below exercise multi-row-tile grids.
# Production sizing: pick the largest TH whose (TH+halo)*W*C working set
# (x2 for double buffering) fits the per-generation VMEM budget
# (~24 MiB on v7x, ~48 MiB on v5e/v6e).
_MAX_TH = 8

_USE_ELEMENT = None   # lazily probed (pl.Element halo support)


def _cparams():
    return pltpu.CompilerParams(
        dimension_semantics=("parallel", "parallel"),
        vmem_limit_bytes=_VMEM_LIMIT)


def _pick_th(Ho):
    th = min(Ho, _MAX_TH)
    while Ho % th:
        th -= 1
    return th


# ----------------------------------------------------------------------------
# pl.Element halo-tiling probe (falls back to whole-image blocks if the
# element-indexed overlapping-window pattern is unavailable/different).
# ----------------------------------------------------------------------------
def _probe_kernel(x_ref, o_ref):
    o_ref[0] = x_ref[0, 1:9, :, :]


def _probe_element_support():
    try:
        x = jnp.arange(1 * 18 * 8 * 128, dtype=jnp.float32).reshape(1, 18, 8, 128)
        out = pl.pallas_call(
            _probe_kernel,
            out_shape=jax.ShapeDtypeStruct((1, 16, 8, 128), jnp.float32),
            grid=(1, 2),
            in_specs=[pl.BlockSpec((1, pl.Element(10), 8, 128),
                                   lambda b, i: (b, i * 8, 0, 0))],
            out_specs=pl.BlockSpec((1, 8, 8, 128), lambda b, i: (b, i, 0, 0)),
            compiler_params=_cparams(),
        )(x)
        return bool(jnp.allclose(out, x[:, 1:17]))
    except Exception:
        return False


def _use_element():
    global _USE_ELEMENT
    if _USE_ELEMENT is None:
        _USE_ELEMENT = _probe_element_support()
    return _USE_ELEMENT


def _halo_spec(TH, halo, other_full_dims, Hp):
    """Input spec for an output-row tile needing TH+halo padded rows.

    Element-indexed H dim (overlapping windows) when supported; otherwise the
    caller must have forced TH == Ho (single tile covering the full H)."""
    W, C = other_full_dims
    if _use_element():
        return pl.BlockSpec((1, pl.Element(TH + halo), W, C),
                            lambda b, i: (b, i * TH, 0, 0)), True
    return pl.BlockSpec((1, Hp, W, C), lambda b, i: (b, 0, 0, 0)), False


# ----------------------------------------------------------------------------
# Generic stride-1 conv: per-kh accumulating dots (K = KW*Cin), fused bias+act.
# Input arrives pre-padded; the H grid axis is a halo row tile.
# ----------------------------------------------------------------------------
def _conv_kernel(x_ref, w_ref, b_ref, o_ref, *, KH, KW, act):
    cin = x_ref.shape[3]
    _, TH, Wo, cout = o_ref.shape
    xv = x_ref[0]                                       # (TH+KH-1, Wp, Cin) bf16
    acc = None
    for kh in range(KH):
        if KW == 1:
            patch = xv[kh:kh + TH, 0:Wo, :]
        else:
            patch = jnp.concatenate(
                [xv[kh:kh + TH, kw:kw + Wo, :] for kw in range(KW)], axis=-1)
        patch = patch.reshape(TH * Wo, KW * cin)
        d = jnp.dot(patch, w_ref[kh], preferred_element_type=jnp.float32)
        acc = d if acc is None else acc + d
    acc = acc + b_ref[0]
    if act == "relu":
        acc = jnp.maximum(acc, 0.0)
    o_ref[0] = acc.reshape(TH, Wo, cout).astype(o_ref.dtype)


def conv2d(x, w3, bias, *, KH, KW, PH, PW, act="none", out_dtype=jnp.bfloat16):
    """x: (N,H,W,Cin) NHWC.  w3: (KH, KW*Cin, Cout) per-kh im2col weights."""
    x = x.astype(jnp.bfloat16)
    if PH or PW:
        # TODO(synk): masked in-kernel edge handling would avoid this HBM pad pass.
        x = jnp.pad(x, ((0, 0), (PH, PH), (PW, PW), (0, 0)))
    n, Hp, Wp, cin = x.shape
    KHw, K, cout = w3.shape
    assert KHw == KH and K == KW * cin
    Ho, Wo = Hp - KH + 1, Wp - KW + 1
    TH = _pick_th(Ho)
    nt = Ho // TH
    x_spec, tiled = _halo_spec(TH, KH - 1, (Wp, cin), Hp)
    if not tiled:
        TH, nt = Ho, 1
    kernel = functools.partial(_conv_kernel, KH=KH, KW=KW, act=act)
    return pl.pallas_call(
        kernel,
        out_shape=jax.ShapeDtypeStruct((n, Ho, Wo, cout), out_dtype),
        grid=(n, nt),
        in_specs=[x_spec,
                  pl.BlockSpec((KH, K, cout), lambda b, i: (0, 0, 0)),
                  pl.BlockSpec((1, cout), lambda b, i: (0, 0))],
        out_specs=pl.BlockSpec((1, TH, Wo, cout), lambda b, i: (b, i, 0, 0)),
        compiler_params=_cparams(),
    )(x, w3.astype(jnp.bfloat16), bias.reshape(1, cout).astype(jnp.float32))


# ----------------------------------------------------------------------------
# Backbone stride-2 3x3 conv + ReLU.
# The zero-padded input is reinterpreted (FREE row-major reshape, no HBM pass)
# as a paired layout (N, Ho+1, W+2, 2C) where dim2 = (H-parity, W-pair) and
# dim3 = (W-parity, C); the kernel then does a 2x2-over-pairs conv as 3
# accumulating dots of K = 4*Cin.
# ----------------------------------------------------------------------------
def _conv_s2_kernel(x_ref, w_ref, b_ref, o_ref):
    c2 = x_ref.shape[3]                                 # 2*Cin
    _, TH, Wo, cout = o_ref.shape
    Wp2 = Wo + 1
    xv = x_ref[0]                                       # (TH+1, 2*Wp2, 2*Cin)
    acc = None
    for idx, (a, p) in enumerate(((0, 0), (0, 1), (1, 0))):
        base = p * Wp2
        patch = jnp.concatenate(
            [xv[a:a + TH, base:base + Wo, :],
             xv[a:a + TH, base + 1:base + 1 + Wo, :]], axis=-1)
        patch = patch.reshape(TH * Wo, 2 * c2)
        d = jnp.dot(patch, w_ref[idx], preferred_element_type=jnp.float32)
        acc = d if acc is None else acc + d
    acc = jnp.maximum(acc + b_ref[0], 0.0)
    o_ref[0] = acc.reshape(TH, Wo, cout).astype(o_ref.dtype)


def conv3x3_s2_relu(x, wpair, bias):
    x = x.astype(jnp.bfloat16)
    n, H, W, C = x.shape
    Ho, Wo = H // 2, W // 2
    xp = jnp.pad(x, ((0, 0), (1, 1), (1, 1), (0, 0)))
    xpair = xp.reshape(n, Ho + 1, W + 2, 2 * C)          # pure bitcast reshape
    cout = wpair.shape[-1]
    TH = _pick_th(Ho)
    nt = Ho // TH
    x_spec, tiled = _halo_spec(TH, 1, (W + 2, 2 * C), Ho + 1)
    if not tiled:
        TH, nt = Ho, 1
    return pl.pallas_call(
        _conv_s2_kernel,
        out_shape=jax.ShapeDtypeStruct((n, Ho, Wo, cout), jnp.bfloat16),
        grid=(n, nt),
        in_specs=[x_spec,
                  pl.BlockSpec(wpair.shape, lambda b, i: (0, 0, 0)),
                  pl.BlockSpec((1, cout), lambda b, i: (0, 0))],
        out_specs=pl.BlockSpec((1, TH, Wo, cout), lambda b, i: (b, i, 0, 0)),
        compiler_params=_cparams(),
    )(xpair, wpair.astype(jnp.bfloat16), bias.reshape(1, cout).astype(jnp.float32))


def _pair_weight_3x3s2(w):
    """(3,3,Cin,Cout) -> (3, 4*Cin, Cout) matching the paired stride-2 layout."""
    _, _, cin, cout = w.shape
    wp = jnp.zeros((3, 4 * cin, cout), jnp.float32)
    for idx, (a, p) in enumerate(((0, 0), (0, 1), (1, 0))):
        ih = 2 * a + p
        for b in range(2):
            for q in range(2):
                iw = 2 * b + q
                if iw < 3:
                    wp = wp.at[idx, (2 * b + q) * cin:(2 * b + q + 1) * cin, :].set(
                        w[ih, iw].astype(jnp.float32))
    return wp


# ----------------------------------------------------------------------------
# Fused CombinationModule: conv3x3 (BN folded) + ReLU on the (bf16) upsampled
# low-res input, then the concat+1x1 conv as two matmuls into one accumulator.
# ----------------------------------------------------------------------------
def _comb_kernel(xl_ref, xu_ref, wup_ref, bup_ref, wcl_ref, wcu_ref, bc_ref, o_ref):
    c_low = xl_ref.shape[3]
    _, TH, W, c_up = o_ref.shape
    xv = xl_ref[0]                                      # (TH+2, W+2, c_low)
    acc = None
    for kh in range(3):
        patch = jnp.concatenate(
            [xv[kh:kh + TH, kw:kw + W, :] for kw in range(3)], axis=-1)
        patch = patch.reshape(TH * W, 3 * c_low)
        d = jnp.dot(patch, wup_ref[kh], preferred_element_type=jnp.float32)
        acc = d if acc is None else acc + d
    t = jnp.maximum(acc + bup_ref[0], 0.0).astype(jnp.bfloat16)
    up = xu_ref[0].reshape(TH * W, c_up)
    out = jnp.dot(t, wcl_ref[...], preferred_element_type=jnp.float32)
    out = out + jnp.dot(up, wcu_ref[...], preferred_element_type=jnp.float32)
    out = jnp.maximum(out + bc_ref[0], 0.0)
    o_ref[0] = out.reshape(TH, W, c_up).astype(o_ref.dtype)


def combination_module(x_low, x_up, cp):
    n, Hu, Wu, c_up = x_up.shape
    c_low = x_low.shape[-1]
    # bf16 bilinear upsample with the 1-px zero pad folded into the same
    # producer (single full-res HBM intermediate instead of f32 resize + pad).
    # TODO(synk): fold the 2x upsample into the kernel (4-phase composite conv).
    xl = jax.image.resize(x_low.astype(jnp.bfloat16), (n, Hu, Wu, c_low),
                          method="bilinear")
    xl = jnp.pad(xl, ((0, 0), (1, 1), (1, 1), (0, 0)))
    x_up = x_up.astype(jnp.bfloat16)
    TH = _pick_th(Hu)
    nt = Hu // TH
    xl_spec, tiled = _halo_spec(TH, 2, (Wu + 2, c_low), Hu + 2)
    if not tiled:
        TH, nt = Hu, 1
    return pl.pallas_call(
        _comb_kernel,
        out_shape=jax.ShapeDtypeStruct((n, Hu, Wu, c_up), jnp.bfloat16),
        grid=(n, nt),
        in_specs=[xl_spec,
                  pl.BlockSpec((1, TH, Wu, c_up), lambda b, i: (b, i, 0, 0)),
                  pl.BlockSpec(cp["wup"].shape, lambda b, i: (0, 0, 0)),
                  pl.BlockSpec((1, c_up), lambda b, i: (0, 0)),
                  pl.BlockSpec((c_up, c_up), lambda b, i: (0, 0)),
                  pl.BlockSpec((c_up, c_up), lambda b, i: (0, 0)),
                  pl.BlockSpec((1, c_up), lambda b, i: (0, 0))],
        out_specs=pl.BlockSpec((1, TH, Wu, c_up), lambda b, i: (b, i, 0, 0)),
        compiler_params=_cparams(),
    )(xl, x_up, cp["wup"], cp["bup"].reshape(1, c_up),
      cp["wcl"], cp["wcu"], cp["bc"].reshape(1, c_up))


# ----------------------------------------------------------------------------
# Fused heads kernel: reads the 3-px padded c2_combine ONCE per tile.
#  (a) grouped heads (hm/reg/cls_theta): 3x3 stage-1 + ReLU + 1x1 stage-2,
#      packed into one 128-lane f32 slab, hm sigmoid applied via channel mask.
#  (b) wh 7x7 stage-1 + ReLU (bf16 intermediate for the separate 7x7 stage-2).
# ----------------------------------------------------------------------------
def _head_kernel(x_ref, wwh1_ref, bwh1_ref, wg1_ref, bg1_ref, wg2_ref, bg2_ref,
                 grp_ref, wh1_ref, *, n_hm):
    C2 = x_ref.shape[3]
    _, TH, Wc, grp_pad = grp_ref.shape
    head_conv = wh1_ref.shape[3]
    xv = x_ref[0]                                       # (TH+6, Wc+6, C2)

    # wh stage-1 (7x7, relu)
    acc = None
    for kh in range(7):
        patch = jnp.concatenate(
            [xv[kh:kh + TH, kw:kw + Wc, :] for kw in range(7)], axis=-1)
        patch = patch.reshape(TH * Wc, 7 * C2)
        d = jnp.dot(patch, wwh1_ref[kh], preferred_element_type=jnp.float32)
        acc = d if acc is None else acc + d
    acc = jnp.maximum(acc + bwh1_ref[0], 0.0)
    wh1_ref[0] = acc.reshape(TH, Wc, head_conv).astype(wh1_ref.dtype)

    # grouped heads stage-1 (3x3, relu) + stage-2 (1x1) fused, never hits HBM
    accg = None
    for kh in range(3):
        patch = jnp.concatenate(
            [xv[2 + kh:2 + kh + TH, 2 + kw:2 + kw + Wc, :] for kw in range(3)],
            axis=-1)
        patch = patch.reshape(TH * Wc, 3 * C2)
        d = jnp.dot(patch, wg1_ref[kh], preferred_element_type=jnp.float32)
        accg = d if accg is None else accg + d
    t = jnp.maximum(accg + bg1_ref[0], 0.0).astype(jnp.bfloat16)
    out = jnp.dot(t, wg2_ref[...], preferred_element_type=jnp.float32) + bg2_ref[0]
    ch = jax.lax.broadcasted_iota(jnp.int32, out.shape, 1)
    out = jnp.where(ch < n_hm, jax.nn.sigmoid(out), out)   # in-kernel hm sigmoid
    grp_ref[0] = out.reshape(TH, Wc, grp_pad).astype(grp_ref.dtype)


def fused_heads(x, prep, heads):
    n, Hc, Wc, C2 = x.shape
    head_conv = prep["wh_w1"].shape[-1]
    grp_pad = prep["grp_w2"].shape[-1]
    xpad = jnp.pad(x.astype(jnp.bfloat16), ((0, 0), (3, 3), (3, 3), (0, 0)))
    TH = _pick_th(Hc)
    nt = Hc // TH
    x_spec, tiled = _halo_spec(TH, 6, (Wc + 6, C2), Hc + 6)
    if not tiled:
        TH, nt = Hc, 1
    kernel = functools.partial(_head_kernel, n_hm=heads["hm"])
    grp_out, wh1 = pl.pallas_call(
        kernel,
        out_shape=(jax.ShapeDtypeStruct((n, Hc, Wc, grp_pad), jnp.float32),
                   jax.ShapeDtypeStruct((n, Hc, Wc, head_conv), jnp.bfloat16)),
        grid=(n, nt),
        in_specs=[x_spec,
                  pl.BlockSpec(prep["wh_w1"].shape, lambda b, i: (0, 0, 0)),
                  pl.BlockSpec((1, head_conv), lambda b, i: (0, 0)),
                  pl.BlockSpec(prep["grp_w1"].shape, lambda b, i: (0, 0, 0)),
                  pl.BlockSpec((1, prep["grp_w1"].shape[-1]), lambda b, i: (0, 0)),
                  pl.BlockSpec(prep["grp_w2"].shape, lambda b, i: (0, 0)),
                  pl.BlockSpec((1, grp_pad), lambda b, i: (0, 0))],
        out_specs=(pl.BlockSpec((1, TH, Wc, grp_pad), lambda b, i: (b, i, 0, 0)),
                   pl.BlockSpec((1, TH, Wc, head_conv), lambda b, i: (b, i, 0, 0))),
        compiler_params=_cparams(),
    )(xpad, prep["wh_w1"], prep["wh_b1"].reshape(1, -1),
      prep["grp_w1"], prep["grp_b1"].reshape(1, -1),
      prep["grp_w2"], prep["grp_b2"].reshape(1, -1))
    return grp_out, wh1


# ----------------------------------------------------------------------------
# Deterministic parameter construction (stand-in backbone, BN folded eval mode).
# ----------------------------------------------------------------------------
_BN_EPS = 1e-5


def _w(key, kh, kw, cin, cout, std=0.05):
    return std * jax.random.normal(key, (kh, kw, cin, cout), jnp.float32)


def make_params(key, channels, heads, head_conv, final_kernel, l1):
    ks = iter(jax.random.split(key, 256))
    p = {}

    # backbone stand-in (resnet50 replacement): conv3x3 stride-2 + ReLU per stage
    for i in range(5):
        p[f"bb{i}_w"] = _w(next(ks), 3, 3, channels[i], channels[i + 1])
        p[f"bb{i}_b"] = 0.01 * jax.random.normal(next(ks), (channels[i + 1],),
                                                 jnp.float32)

    # CombinationModule (batch_norm variant), BN folded (eval mode)
    def comb_params(c_low, c_up):
        gamma, beta, mean, var = 1.0, 0.0, 0.0, 1.0
        bn_scale = gamma / jnp.sqrt(var + _BN_EPS)
        d = {}
        d["up_w"] = _w(next(ks), 3, 3, c_low, c_up)
        up_cb = 0.01 * jax.random.normal(next(ks), (c_up,), jnp.float32)
        d["up_scale"] = jnp.full((c_up,), bn_scale, jnp.float32)
        d["up_bias"] = (up_cb - mean) * bn_scale + beta
        d["cat_w"] = _w(next(ks), 1, 1, 2 * c_up, c_up)
        cat_cb = 0.01 * jax.random.normal(next(ks), (c_up,), jnp.float32)
        d["cat_scale"] = jnp.full((c_up,), bn_scale, jnp.float32)
        d["cat_bias"] = (cat_cb - mean) * bn_scale + beta
        return d

    p["dec_c4"] = comb_params(channels[5], channels[4])
    p["dec_c3"] = comb_params(channels[4], channels[3])
    p["dec_c2"] = comb_params(channels[3], channels[2])

    # heads
    cin = channels[l1]
    for head, classes in heads.items():
        k1, k2 = (7, 7) if head == "wh" else (3, final_kernel)
        p[f"{head}_w1"] = _w(next(ks), k1, k1, cin, head_conv)
        p[f"{head}_b1"] = jnp.zeros((head_conv,), jnp.float32)
        p[f"{head}_w2"] = _w(next(ks), k2, k2, head_conv, classes)
        if "hm" in head:
            p[f"{head}_b2"] = jnp.full((classes,), -2.19, jnp.float32)
        else:
            p[f"{head}_b2"] = jnp.zeros((classes,), jnp.float32)

    # c0_conv: Conv(3->c1,3x3)+ReLU, Conv(c1->c1,3x3)+ReLU
    c1 = channels[1]
    p["c0_w1"] = _w(next(ks), 3, 3, channels[0], c1)
    p["c0_b1"] = jnp.zeros((c1,), jnp.float32)
    p["c0_w2"] = _w(next(ks), 3, 3, c1, c1)
    p["c0_b2"] = jnp.zeros((c1,), jnp.float32)
    return p


def prepare_params(p, heads, head_conv, final_kernel, channels, l1):
    """Fold BN, flatten to per-kh im2col bf16, build paired/fused head weights."""
    assert final_kernel == 1, "fused head path assumes a 1x1 second-stage conv"
    assert "hm" in heads and "wh" in heads
    prep = {}

    for i in range(5):
        prep[f"bb{i}_w"] = _pair_weight_3x3s2(p[f"bb{i}_w"]).astype(jnp.bfloat16)
        prep[f"bb{i}_b"] = p[f"bb{i}_b"].astype(jnp.float32)

    for name in ("dec_c4", "dec_c3", "dec_c2"):
        d = p[name]
        c_low, c_up = d["up_w"].shape[2], d["up_w"].shape[3]
        prep[name] = {
            "wup": (d["up_w"] * d["up_scale"]).reshape(3, 3 * c_low, c_up)
                   .astype(jnp.bfloat16),
            "bup": d["up_bias"].astype(jnp.float32),
            "wcl": (d["cat_w"][0, 0, :c_up, :] * d["cat_scale"]).astype(jnp.bfloat16),
            "wcu": (d["cat_w"][0, 0, c_up:, :] * d["cat_scale"]).astype(jnp.bfloat16),
            "bc": d["cat_bias"].astype(jnp.float32),
        }

    cin = channels[l1]

    # grouped 3x3 heads (hm/reg/cls_theta): shared stage-1, block-diag 1x1
    # stage-2 packed into one 128-padded output slab (lane-dense stores).
    grp = [h for h in heads if h != "wh"]
    assert grp[0] == "hm"
    w1g = jnp.concatenate([p[f"{h}_w1"] for h in grp], axis=-1)
    prep["grp_w1"] = w1g.reshape(3, 3 * cin, -1).astype(jnp.bfloat16)
    prep["grp_b1"] = jnp.concatenate([p[f"{h}_b1"] for h in grp]).astype(jnp.float32)
    G, tot = len(grp), sum(heads[h] for h in grp)
    w2g = jnp.zeros((G * head_conv, tot), jnp.float32)
    b2g = jnp.zeros((tot,), jnp.float32)
    offs, off = {}, 0
    for gi, h in enumerate(grp):
        c = heads[h]
        w2g = w2g.at[gi * head_conv:(gi + 1) * head_conv, off:off + c].set(
            p[f"{h}_w2"][0, 0])
        b2g = b2g.at[off:off + c].set(p[f"{h}_b2"])
        offs[h] = (off, c)
        off += c
    padc = (-tot) % 128
    if padc:
        w2g = jnp.pad(w2g, ((0, 0), (0, padc)))
        b2g = jnp.pad(b2g, ((0, padc),))
    prep["grp_w2"] = w2g.astype(jnp.bfloat16)
    prep["grp_b2"] = b2g.astype(jnp.float32)
    prep["grp_offs"] = offs

    # wh head (7x7 / 7x7), final Cout padded to 128
    whc = heads["wh"]
    prep["wh_w1"] = p["wh_w1"].reshape(7, 7 * cin, head_conv).astype(jnp.bfloat16)
    prep["wh_b1"] = p["wh_b1"].astype(jnp.float32)
    w2, b2 = p["wh_w2"], p["wh_b2"]
    padw = (-whc) % 128
    if padw:
        w2 = jnp.pad(w2, ((0, 0), (0, 0), (0, 0), (0, padw)))
        b2 = jnp.pad(b2, ((0, padw),))
    prep["wh_w2"] = w2.reshape(7, 7 * head_conv, -1).astype(jnp.bfloat16)
    prep["wh_b2"] = b2.astype(jnp.float32)
    prep["wh_classes"] = whc

    c1 = channels[1]
    prep["c0_w1"] = p["c0_w1"].reshape(3, 3 * channels[0], c1).astype(jnp.bfloat16)
    prep["c0_b1"] = p["c0_b1"].astype(jnp.float32)
    prep["c0_w2"] = p["c0_w2"].reshape(3, 3 * c1, c1).astype(jnp.bfloat16)
    prep["c0_b2"] = p["c0_b2"].astype(jnp.float32)
    return prep


# ----------------------------------------------------------------------------
# Forward pass (glue in plain JAX, all conv compute inside Pallas kernels).
# ----------------------------------------------------------------------------
def forward(image_nchw, prep, heads):
    x = jnp.transpose(image_nchw, (0, 2, 3, 1)).astype(jnp.bfloat16)  # NCHW->NHWC

    # backbone pyramid c0..c5: stride-2 conv3x3 + ReLU per stage (paired layout)
    feats = [x]
    h = x
    for i in range(5):
        h = conv3x3_s2_relu(h, prep[f"bb{i}_w"], prep[f"bb{i}_b"])
        feats.append(h)

    c4_combine = combination_module(feats[5], feats[4], prep["dec_c4"])
    c3_combine = combination_module(c4_combine, feats[3], prep["dec_c3"])
    c2_combine = combination_module(c3_combine, feats[2], prep["dec_c2"])

    dec_dict = {}

    # fused heads: grouped (hm/reg/cls_theta) slab + wh 7x7 stage-1
    grp_out, wh1 = fused_heads(c2_combine, prep, heads)
    for hname, (off, c) in prep["grp_offs"].items():
        dec_dict[hname] = grp_out[..., off:off + c]      # hm already sigmoid'ed

    # wh stage-2 (7x7), final Cout padded to 128 for lane-dense stores
    w2 = conv2d(wh1, prep["wh_w2"], prep["wh_b2"],
                KH=7, KW=7, PH=3, PW=3, act="none", out_dtype=jnp.float32)
    dec_dict["wh"] = w2[..., :prep["wh_classes"]]

    # forward_seg prologue: feat[0] = self.c0_conv(feat[0])
    c0f = conv2d(feats[0], prep["c0_w1"], prep["c0_b1"],
                 KH=3, KW=3, PH=1, PW=1, act="relu")
    c0f = conv2d(c0f, prep["c0_w2"], prep["c0_b2"],
                 KH=3, KW=3, PH=1, PW=1, act="relu")

    dec_dict["feat"] = [c0f, feats[1], c2_combine, c3_combine, c4_combine]
    # TODO(synk): per-bbox ROI cropping (grid_sample), seg_branch and point
    #             heads are data-dependent host loops; omitted.
    return dec_dict


# ----------------------------------------------------------------------------
# Numeric spot-checks of the two conv formulations against lax.conv (bf16
# compute vs f32 reference, loose tolerance).
# ----------------------------------------------------------------------------
def _check_convs(key):
    k1, k2, k3 = jax.random.split(key, 3)
    x = jax.random.normal(k1, (1, 32, 32, 8), jnp.float32)
    w = 0.05 * jax.random.normal(k2, (3, 3, 8, 16), jnp.float32)
    b = 0.01 * jax.random.normal(k3, (16,), jnp.float32)

    got = conv3x3_s2_relu(x, _pair_weight_3x3s2(w), b).astype(jnp.float32)
    ref = jax.lax.conv_general_dilated(x, w, (2, 2), ((1, 1), (1, 1)),
                                       dimension_numbers=("NHWC", "HWIO", "NHWC"))
    ref = jnp.maximum(ref + b, 0.0)
    assert bool(jnp.allclose(got, ref, atol=5e-2, rtol=5e-2)), "stride-2 conv mismatch"

    got = conv2d(x, w.reshape(3, 24, 16), b, KH=3, KW=3, PH=1, PW=1,
                 act="relu").astype(jnp.float32)
    ref = jax.lax.conv_general_dilated(x, w, (1, 1), ((1, 1), (1, 1)),
                                       dimension_numbers=("NHWC", "HWIO", "NHWC"))
    ref = jnp.maximum(ref + b, 0.0)
    assert bool(jnp.allclose(got, ref, atol=5e-2, rtol=5e-2)), "stride-1 conv mismatch"


# ----------------------------------------------------------------------------
if __name__ == "__main__":
    # Scaled-down config (structure mirrors the module; channels shrunk):
    # original channels [3, 64, 256, 512, 1024, 2048] -> [3, 8, 16, 32, 64, 128]
    channels = [3, 8, 16, 32, 64, 128]
    heads = {"hm": 2, "wh": 10, "reg": 2, "cls_theta": 1}
    down_ratio, final_kernel, head_conv = 4, 1, 16
    l1 = 2                                          # int(log2(down_ratio))

    key = jax.random.PRNGKey(0)
    pkey, xkey, ckey = jax.random.split(key, 3)
    params = make_params(pkey, channels, heads, head_conv, final_kernel, l1)
    prep = prepare_params(params, heads, head_conv, final_kernel, channels, l1)

    _check_convs(ckey)                              # validates halo-tiled kernels

    image = jax.random.normal(xkey, (2, 3, 64, 64), jnp.float32)    # NCHW input

    fwd = jax.jit(lambda img: forward(img, prep, heads))
    out = fwd(image)
    jax.block_until_ready(out)

    # sanity: hm is sigmoid-activated, spatial = image / down_ratio
    assert out["hm"].shape == (2, 16, 16, 2)
    assert out["wh"].shape == (2, 16, 16, 10)
    assert out["reg"].shape == (2, 16, 16, 2)
    assert out["cls_theta"].shape == (2, 16, 16, 1)
    assert out["feat"][0].shape == (2, 64, 64, channels[1])
    assert bool(jnp.all(out["hm"] >= 0.0)) and bool(jnp.all(out["hm"] <= 1.0))
    print("KERNEL_OK")
</pallas_src>

<mosaic_0001>
module attributes {stable_mosaic.version = 11 : i64} {
  func.func @_conv_s2_kernel(%arg0: i32, %arg1: i32, %arg2: memref<1x17x34x16xbf16, #tpu.memory_space<vmem>>, %arg3: memref<3x32x16xbf16, #tpu.memory_space<vmem>>, %arg4: memref<1x16xf32, #tpu.memory_space<vmem>>, %arg5: memref<1x16x16x16xbf16, #tpu.memory_space<vmem>>) attributes {dimension_semantics = [#tpu.dimension_semantics<parallel>, #tpu.dimension_semantics<parallel>], iteration_bounds = array<i64: 1, 1>, scalar_prefetch = 0 : i64, scratch_operands = 0 : i64, tpu.core_type = #tpu.core_type<tc>, window_params = [{transform_indices = @transform_0, window_bounds = array<i64: 1, 17, 34, 16>}, {pipeline_mode = #tpu.pipeline_mode<synchronous>, transform_indices = @transform_1, window_bounds = array<i64: 3, 32, 16>}, {pipeline_mode = #tpu.pipeline_mode<synchronous>, transform_indices = @transform_2, window_bounds = array<i64: 1, 16>}, {transform_indices = @transform_3, window_bounds = array<i64: 1, 16, 16, 16>}]} {
    %c0 = arith.constant 0 : index
    %c0_0 = arith.constant 0 : index
    %c0_1 = arith.constant 0 : index
    %c0_2 = arith.constant 0 : index
    %0 = vector.load %arg2[%c0, %c0_0, %c0_1, %c0_2] : memref<1x17x34x16xbf16, #tpu.memory_space<vmem>>, vector<1x17x34x16xbf16>
    %1 = vector.shape_cast %0 : vector<1x17x34x16xbf16> to vector<17x34x16xbf16>
    %2 = vector.extract_strided_slice %1 {offsets = [0, 0, 0], sizes = [16, 16, 16], strides = [1, 1, 1]} : vector<17x34x16xbf16> to vector<16x16x16xbf16>
    %3 = vector.extract_strided_slice %1 {offsets = [0, 1, 0], sizes = [16, 16, 16], strides = [1, 1, 1]} : vector<17x34x16xbf16> to vector<16x16x16xbf16>
    %4 = tpu.concatenate %2, %3 in 2 : vector<16x16x16xbf16>, vector<16x16x16xbf16> -> vector<16x16x32xbf16>
    %5 = vector.shape_cast %4 : vector<16x16x32xbf16> to vector<256x32xbf16>
    %c0_3 = arith.constant 0 : index
    %c0_4 = arith.constant 0 : index
    %c0_5 = arith.constant 0 : index
    %6 = vector.load %arg3[%c0_3, %c0_4, %c0_5] : memref<3x32x16xbf16, #tpu.memory_space<vmem>>, vector<1x32x16xbf16>
    %7 = vector.shape_cast %6 : vector<1x32x16xbf16> to vector<32x16xbf16>
    %cst = arith.constant dense<0.000000e+00> : vector<256x16xf32>
    %8 = tpu.matmul %5, %7, %cst {dimension_numbers = #tpu.dot_dimension_numbers<[1], [0], [0], [1], [0, 0, 1, 1], [], []>} : vector<256x32xbf16>, vector<32x16xbf16>, vector<256x16xf32> -> vector<256x16xf32>
    %9 = vector.extract_strided_slice %1 {offsets = [0, 17, 0], sizes = [16, 16, 16], strides = [1, 1, 1]} : vector<17x34x16xbf16> to vector<16x16x16xbf16>
    %10 = vector.extract_strided_slice %1 {offsets = [0, 18, 0], sizes = [16, 16, 16], strides = [1, 1, 1]} : vector<17x34x16xbf16> to vector<16x16x16xbf16>
    %11 = tpu.concatenate %9, %10 in 2 : vector<16x16x16xbf16>, vector<16x16x16xbf16> -> vector<16x16x32xbf16>
    %12 = vector.shape_cast %11 : vector<16x16x32xbf16> to vector<256x32xbf16>
    %c1 = arith.constant 1 : index
    %c0_6 = arith.constant 0 : index
    %c0_7 = arith.constant 0 : index
    %13 = vector.load %arg3[%c1, %c0_6, %c0_7] : memref<3x32x16xbf16, #tpu.memory_space<vmem>>, vector<1x32x16xbf16>
    %14 = vector.shape_cast %13 : vector<1x32x16xbf16> to vector<32x16xbf16>
    %cst_8 = arith.constant dense<0.000000e+00> : vector<256x16xf32>
    %15 = tpu.matmul %12, %14, %cst_8 {dimension_numbers = #tpu.dot_dimension_numbers<[1], [0], [0], [1], [0, 0, 1, 1], [], []>} : vector<256x32xbf16>, vector<32x16xbf16>, vector<256x16xf32> -> vector<256x16xf32>
    %16 = arith.addf %8, %15 : vector<256x16xf32>
    %17 = vector.extract_strided_slice %1 {offsets = [1, 0, 0], sizes = [16, 16, 16], strides = [1, 1, 1]} : vector<17x34x16xbf16> to vector<16x16x16xbf16>
    %18 = vector.extract_strided_slice %1 {offsets = [1, 1, 0], sizes = [16, 16, 16], strides = [1, 1, 1]} : vector<17x34x16xbf16> to vector<16x16x16xbf16>
    %19 = tpu.concatenate %17, %18 in 2 : vector<16x16x16xbf16>, vector<16x16x16xbf16> -> vector<16x16x32xbf16>
    %20 = vector.shape_cast %19 : vector<16x16x32xbf16> to vector<256x32xbf16>
    %c2 = arith.constant 2 : index
    %c0_9 = arith.constant 0 : index
    %c0_10 = arith.constant 0 : index
    %21 = vector.load %arg3[%c2, %c0_9, %c0_10] : memref<3x32x16xbf16, #tpu.memory_space<vmem>>, vector<1x32x16xbf16>
    %22 = vector.shape_cast %21 : vector<1x32x16xbf16> to vector<32x16xbf16>
    %cst_11 = arith.constant dense<0.000000e+00> : vector<256x16xf32>
    %23 = tpu.matmul %20, %22, %cst_11 {dimension_numbers = #tpu.dot_dimension_numbers<[1], [0], [0], [1], [0, 0, 1, 1], [], []>} : vector<256x32xbf16>, vector<32x16xbf16>, vector<256x16xf32> -> vector<256x16xf32>
    %24 = arith.addf %16, %23 : vector<256x16xf32>
    %c0_12 = arith.constant 0 : index
    %c0_13 = arith.constant 0 : index
    %25 = vector.load %arg4[%c0_12, %c0_13] : memref<1x16xf32, #tpu.memory_space<vmem>>, vector<1x16xf32>
    %26 = vector.shape_cast %25 : vector<1x16xf32> to vector<16xf32>
    %27 = vector.shape_cast %26 : vector<16xf32> to vector<1x16xf32>
    %28 = vector.broadcast %27 : vector<1x16xf32> to vector<256x16xf32>
    %29 = arith.addf %24, %28 : vector<256x16xf32>
    %cst_14 = arith.constant 0.000000e+00 : f32
    %30 = vector.broadcast %cst_14 : f32 to vector<256x16xf32>
    %31 = arith.maximumf %29, %30 : vector<256x16xf32>
    %32 = vector.shape_cast %31 : vector<256x16xf32> to vector<16x16x16xf32>
    %33 = arith.truncf %32 : vector<16x16x16xf32> to vector<16x16x16xbf16>
    %c0_15 = arith.constant 0 : index
    %c0_16 = arith.constant 0 : index
    %c0_17 = arith.constant 0 : index
    %c0_18 = arith.constant 0 : index
    %34 = vector.load %arg5[%c0_15, %c0_16, %c0_17, %c0_18] : memref<1x16x16x16xbf16, #tpu.memory_space<vmem>>, vector<1x16x16x16xbf16>
    %35 = vector.shape_cast %34 : vector<1x16x16x16xbf16> to vector<16x16x16xbf16>
    %36 = vector.shape_cast %33 : vector<16x16x16xbf16> to vector<1x16x16x16xbf16>
    tpu.vector_store %arg5[%c0_15, %c0_16, %c0_17, %c0_18], %36 {strides = array<i32>} : memref<1x16x16x16xbf16, #tpu.memory_space<vmem>>, vector<1x16x16x16xbf16>,
    return
  }
  func.func @transform_0(%arg0: i32, %arg1: i32) -> (i32, i32, i32, i32) {
    %c0_i32 = arith.constant 0 : i32
    %c0_i32_0 = arith.constant 0 : i32
    %c0_i32_1 = arith.constant 0 : i32
    %c0_i32_2 = arith.constant 0 : i32
    return %arg0, %c0_i32, %c0_i32_0, %c0_i32_1 : i32, i32, i32, i32
  }
  func.func @transform_1(%arg0: i32, %arg1: i32) -> (i32, i32, i32) {
    %c0_i32 = arith.constant 0 : i32
    %c0_i32_0 = arith.constant 0 : i32
    %c0_i32_1 = arith.constant 0 : i32
    %c0_i32_2 = arith.constant 0 : i32
    return %c0_i32, %c0_i32_0, %c0_i32_1 : i32, i32, i32
  }
  func.func @transform_2(%arg0: i32, %arg1: i32) -> (i32, i32) {
    %c0_i32 = arith.constant 0 : i32
    %c0_i32_0 = arith.constant 0 : i32
    %c0_i32_1 = arith.constant 0 : i32
    return %c0_i32, %c0_i32_0 : i32, i32
  }
  func.func @transform_3(%arg0: i32, %arg1: i32) -> (i32, i32, i32, i32) {
    %c0_i32 = arith.constant 0 : i32
    %c0_i32_0 = arith.constant 0 : i32
    %c0_i32_1 = arith.constant 0 : i32
    return %arg0, %arg1, %c0_i32, %c0_i32_0 : i32, i32, i32, i32
  }
}

</mosaic_0001>

<bundles_post_ra>
// kernel: tpu_custom_call.1
= control target key start
LH: loop header
LB: loop body
LE: loop exit
PB: predicated region body
PF: predicated region fallthrough
CT: control target
= control target key end

     0   :  { %s2758_s0 = inlined_call_operand.vmem [shape: bf16[1,17,34,16], index: 0, kind: input, shape index: {}]   ;;  %s2759_s1 = inlined_call_operand.vmem [shape: bf16[3,32,16], index: 1, kind: input, shape index: {}]   ;;  %s2760_s2 = inlined_call_operand.vmem [shape: f32[1,16], index: 2, kind: input, shape index: {}]   ;;  %s2761_s3 = inlined_call_operand.hbm [shape: bf16[1,16,16,16], index: 3, kind: output, shape index: {}]  }
   0x1   :  { %v1975_v0 = vld [vmem:[%s2758_s0 + $0xf8] sm:$0xff]   ;;  %v80_v1 = vld [vmem:[%s2758_s0 + $0x100] sm:$0x1]  ;;  %v1985_v5 = vld [vmem:[%s2758_s0 + $0x8] sm:$0xff]  }
   0x2   :  { %v546_v2 = vunpack.c.l.b16 %v80_v1  ;;  %v754_v3 = vshrl.u32 %v1975_v0, 16  ;;  %v756_v4 = vshll.u32 %v1975_v0, 16  ;;  %v20_v6 = vld [vmem:[%s2758_s0 + $0x10] sm:$0x1]  ;;  %v1993_v7 = vld [vmem:[%s2758_s0 + $0x14] sm:$0xff]  ;;  %v586_v9 = vshrl.u32 %v1985_v5, 16 }
   0x3   :  { %v522_v8 = vunpack.c.l.b16 %v20_v6  ;;  %v588_v10 = vshll.u32 %v1985_v5, 16  ;;  %v2000_v11 = vld [vmem:[%s2758_s0 + $0x1c] sm:$0xff]   ;;  %v1873_v15 = vunpack.c.l.b16 %v1985_v5  ;;  %v241_v18 = vshrl.u32 %v1993_v7, 16 }
   0x4   :  { %v2002_v12 = vpack.c.b16 %v546_v2, %v546_v2  ;;  %v758_v13 = vrot.slane %v756_v4, 1  ;;  %v196_v14 = vunpack.c.l.b16 %v2000_v11  ;;  %v243_v19 = vshll.u32 %v1993_v7, 16  ;;  %v2013_v20 = vld [vmem:[%s2758_s0] sm:$0xff] }
   0x5   :  { %v2006_v16 = vpack.c.b16 %v522_v8, %v522_v8  ;;  %v590_v17 = vrot.slane %v588_v10, 1 }
   0x6   :  { %v759_v21 = vor.u32 %v758_v13, %v754_v3  ;;  %v761_v22 = vshll.u32 %v2002_v12, 16  ;;  %v212_v23 = vpack.c.b16 %v196_v14, %v196_v14 }
   0x7   :  { %8 = vsyncpa [#allocation3], 0  ;;  %vm227_vm0 = vsmask.f32 7424  ;;  %v591_v24 = vor.u32 %v590_v17, %v586_v9  ;;  %v593_v25 = vshll.u32 %v2006_v16, 16  ;;  %v245_v26 = vrot.slane %v243_v19, 1 }
   0x8   :  { %v2020_v27 = vld [vmem:[%s2758_s0 + $0x10c] sm:$0xff]   ;;  %v763_v28 = vrot.slane %v761_v22, 1  ;;  %v248_v29 = vshll.u32 %v212_v23, 16  ;;  %v211_v30 = vpack.c.b16 %v1873_v15, %v1873_v15  ;;  %v85_v31 = vld [vmem:[%s2758_s0 + $0x114] sm:$0x1]  ;;  %v229_v34 = vshrl.u32 %v2013_v20, 16 }
   0x9   :  { %v595_v32 = vrot.slane %v593_v25, 1  ;;  %v246_v33 = vor.u32 %v245_v26, %v241_v18  ;;  %v231_v35 = vshll.u32 %v2013_v20, 16  ;;  %v208_v39 = vunpack.c.l.b16 %v2020_v27  ;;  %s1948_s30 = smov 16   ;;  %v2039_v45 = vld [vmem:[%s2758_s0 + $0x30] sm:$0xff]   ;;  %v25_v48 = vld [vmem:[%s2758_s0 + $0x24] sm:$0x1] }
   0xa   :  { %v764_v36 = vsel %vm227_vm0, %v759_v21, %v763_v28  ;;  %v250_v37 = vrot.slane %v248_v29, 1  ;;  %v236_v38 = vshll.u32 %v211_v30, 16  ;;  %v548_v42 = vunpack.c.l.b16 %v85_v31  ;;  %v2049_v51 = vld [vmem:[%s2758_s0 + $0x28] sm:$0xff]  ;;  %v30_v2 = vld [vmem:[%s2758_s0 + $0x38] sm:$0x1]  ;;  %v2090_v30 = vld [vmem:[%s2758_s0 + $0x120] sm:$0xff]  }
   0xb   :  { %857 = vrot.lane.b32.xlu0 %v764_v36, %s1948_s30  ;;  %v596_v40 = vsel %vm227_vm0, %v591_v24, %v595_v32  ;;  %v233_v41 = vrot.slane %v231_v35, 1  ;;  %v765_v49 = vshrl.u32 %v2002_v12, 16  ;;  %v770_v50 = vshll.u32 %v2020_v27, 16  ;;  %v90_v63 = vld [vmem:[%s2758_s0 + $0x128] sm:$0x1]  ;;  %v2077_v22 = vld [vmem:[%s2758_s0 + $0x134] sm:$0xff]  }
   0xc   :  { %809 = vrot.lane.b32.xlu1 %v596_v40, %s1948_s30  ;;  %v251_v43 = vsel %vm227_vm0, %v246_v33, %v250_v37  ;;  %v2034_v44 = vpack.c.b16 %v548_v42, %v548_v42  ;;  %v238_v47 = vrot.slane %v236_v38, 1  ;;  %v597_v52 = vshrl.u32 %v2006_v16, 16  ;;  %v2095_v31 = vld [vmem:[%s2758_s0 + $0x44] sm:$0xff]   ;;  %v95_v35 = vld [vmem:[%s2758_s0 + $0x13c] sm:$0x1]  ;;  %s1688_s21 = sshll.u32 %s2761_s3, 4  ;;  %s1689_s21 = int_to_ptr.hbm [resolvable:$true] %s1688_s21 }
   0xd   :  { %422 = vrot.lane.b32.xlu2 %v251_v43, %s1948_s30  ;;  %v234_v46 = vor.u32 %v233_v41, %v229_v34  ;;  %v768_v53 = vshrl.u32 %v2020_v27, 16  ;;  %v1877_v55 = vunpack.c.l.b16 %v2039_v45  ;;  %v772_v56 = vrot.slane %v770_v50, 1  ;;  %v2110_v40 = vld [vmem:[%s2758_s0 + $0x3c] sm:$0xff]  ;;  %s1950_s22 = smov 64   ;;  %s1951_s23 = smov 4  }
   0xe   :  { %v775_v54 = vshll.u32 %v2034_v44, 16  ;;  %v524_v57 = vunpack.c.l.b16 %v25_v48  ;;  %v255_v59 = vshll.u32 %v2049_v51, 16  ;;  %v253_v3 = vshrl.u32 %v2049_v51, 16 }
   0xf   :  { %v239_v58 = vsel %vm227_vm0, %v234_v46, %v238_v47  ;;  %v773_v60 = vor.u32 %v772_v56, %v768_v53  ;;  %v213_v62 = vpack.c.b16 %v1877_v55, %v1877_v55  ;;  %v600_v4 = vshrl.u32 %v2000_v11, 16 }
  0x10   :  { %v777_v61 = vrot.slane %v775_v54, 1  ;;  %v2063_v1 = vpack.c.b16 %v524_v57, %v524_v57  ;;  %v602_v6 = vshll.u32 %v2000_v11, 16  ;;  %v779_v8 = vshrl.u32 %v2034_v44, 16 }
  0x11   :  { %v257_v9 = vrot.slane %v255_v59, 1  ;;  %v550_v10 = vunpack.c.l.b16 %v90_v63  ;;  %v260_v15 = vshll.u32 %v213_v62, 16  ;;  %v526_v17 = vunpack.c.l.b16 %v30_v2  ;;  %v35_v59 = vld [vmem:[%s2758_s0 + $0x4c] sm:$0x1] }
  0x12   :  { %v607_v13 = vshll.u32 %v2063_v1, 16  ;;  %v778_v14 = vsel %vm227_vm0, %v773_v60, %v777_v61  ;;  %v604_v18 = vrot.slane %v602_v6, 1  ;;  %v616_v28 = vshll.u32 %v2039_v45, 16 }
  0x13   :  { %859 = vrot.lane.b32.xlu0 %v765_v49, %s1948_s30  ;;  %v258_v23 = vor.u32 %v257_v9, %v253_v3  ;;  %v2080_v24 = vpack.c.b16 %v550_v10, %v550_v10  ;;  %v262_v25 = vrot.slane %v260_v15, 1  ;;  %v2083_v26 = vpack.c.b16 %v526_v17, %v526_v17  ;;  %v2135_v10 = vld [vmem:[%s2758_s0 + $0x58] sm:$0xff]  }
  0x14   :  { %811 = vrot.lane.b32.xlu1 %v597_v52, %s1948_s30  ;;  %v609_v19 = vrot.slane %v607_v13, 1  ;;  %v605_v21 = vor.u32 %v604_v18, %v600_v4  ;;  %v210_v32 = vunpack.c.l.b16 %v2077_v22  ;;  %v782_v33 = vshrl.u32 %v2090_v30, 16  ;;  %v2141_v13 = vld [vmem:[%s2758_s0 + $0x50] sm:$0xff] }
  0x15   :  { %420 = vrot.lane.b32.xlu2 %v239_v58, %s1948_s30  ;;  %v784_v34 = vshll.u32 %v2090_v30, 16  ;;  %v789_v36 = vshll.u32 %v2080_v24, 16  ;;  %v611_v37 = vshrl.u32 %v2063_v1, 16  ;;  %v614_v38 = vshrl.u32 %v2039_v45, 16 }
  0x16   :  { %v610_v29 = vsel %vm227_vm0, %v605_v21, %v609_v19  ;;  %v618_v42 = vrot.slane %v616_v28, 1  ;;  %v621_v43 = vshll.u32 %v2083_v26, 16  ;;  %v198_v46 = vunpack.c.l.b16 %v2095_v31 }
  0x17   :  { %v786_v41 = vrot.slane %v784_v34, 1  ;;  %v791_v47 = vrot.slane %v789_v36, 1  ;;  %v263_v48 = vsel %vm227_vm0, %v258_v23, %v262_v25  ;;  %v552_v49 = vunpack.c.l.b16 %v95_v35  ;;  %v40_v25 = vld [vmem:[%s2758_s0 + $0x60] sm:$0x1] }
  0x18   :  { %v267_v52 = vshll.u32 %v2110_v40, 16  ;;  %v619_v54 = vor.u32 %v618_v42, %v614_v38  ;;  %v623_v55 = vrot.slane %v621_v43, 1  ;;  %v214_v56 = vpack.c.b16 %v198_v46, %v198_v46 }
  0x19   :  { %v787_v50 = vor.u32 %v786_v41, %v782_v33  ;;  %v2119_v57 = vpack.c.b16 %v552_v49, %v552_v49  ;;  %v798_v58 = vshll.u32 %v2077_v22, 16  ;;  %v793_v60 = vshrl.u32 %v2080_v24, 16 }
  0x1a   :  { %v265_v61 = vshrl.u32 %v2110_v40, 16  ;;  %v269_v62 = vrot.slane %v267_v52, 1  ;;  %v624_v63 = vsel %vm227_vm0, %v619_v54, %v623_v55  ;;  %v272_v2 = vshll.u32 %v214_v56, 16  ;;  %v2174_v54 = vld [vmem:[%s2758_s0 + $0xf0] sm:$0xff] }
  0x1b   :  { %861 = vrot.lane.b32.xlu0 %v778_v14, %s1948_s30  ;;  %v792_v53 = vsel %vm227_vm0, %v787_v50, %v791_v47  ;;  %v528_v3 = vunpack.c.l.b16 %v35_v59  ;;  %v796_v4 = vshrl.u32 %v2077_v22, 16  ;;  %v800_v6 = vrot.slane %v798_v58, 1  ;;  %v2162_v47 = vld [vmem:[%s2758_s0 + $0x6c] sm:$0xff]   ;;  %v45_v59 = vld [vmem:[%s2758_s0 + $0x74] sm:$0x1] }
  0x1c   :  { %863 = vrot.lane.b32.xlu1 %v779_v8, %s1948_s30  ;;  %v803_v8 = vshll.u32 %v2119_v57, 16  ;;  %v625_v9 = vshrl.u32 %v2083_v26, 16  ;;  %v1881_v14 = vunpack.c.l.b16 %v2135_v10  ;;  %v270_v15 = vor.u32 %v269_v62, %v265_v61 }
  0x1d   :  { %813 = vrot.lane.b32.xlu2 %v610_v29, %s1948_s30  ;;  %v274_v17 = vrot.slane %v272_v2, 1  ;;  %v2145_v18 = vpack.c.b16 %v528_v3, %v528_v3  ;;  %v630_v19 = vshll.u32 %v2095_v31, 16  ;;  %v801_v21 = vor.u32 %v800_v6, %v796_v4 }
  0x1e   :  { %v805_v23 = vrot.slane %v803_v8, 1  ;;  %v215_v28 = vpack.c.b16 %v1881_v14, %v1881_v14  ;;  %v279_v29 = vshll.u32 %v2141_v13, 16  ;;  %v628_v33 = vshrl.u32 %v2095_v31, 16 }
  0x1f   :  { %v275_v34 = vsel %vm227_vm0, %v270_v15, %v274_v17  ;;  %v632_v35 = vrot.slane %v630_v19, 1  ;;  %v635_v36 = vshll.u32 %v2145_v18, 16  ;;  %v807_v41 = vshrl.u32 %v2119_v57, 16  ;;  %v2195_v19 = vld [vmem:[%s2758_s0 + $0x80] sm:$0xff]  }
  0x20   :  { %v806_v38 = vsel %vm227_vm0, %v801_v21, %v805_v23  ;;  %v277_v42 = vshrl.u32 %v2141_v13, 16  ;;  %v281_v43 = vrot.slane %v279_v29, 1  ;;  %v284_v46 = vshll.u32 %v215_v28, 16  ;;  %v2201_v28 = vld [vmem:[%s2758_s0 + $0x78] sm:$0xff] }
  0x21   :  { %v637_v49 = vrot.slane %v635_v36, 1  ;;  %v644_v52 = vshll.u32 %v2135_v10, 16  ;;  %v1897_v55 = vunpack.c.l.b16 %v1975_v0  ;;  %v642_v62 = vshrl.u32 %v2135_v10, 16 }
  0x22   :  { %v282_v56 = vor.u32 %v281_v43, %v277_v42  ;;  %v286_v58 = vrot.slane %v284_v46, 1  ;;  %v532_v3 = vunpack.c.l.b16 %v45_v59  ;;  %v375_v6 = vshll.u32 %v2174_v54, 16  ;;  %v2218_v46 = vld [vmem:[%s2758_s0 + $0x64] sm:$0xff] }
  0x23   :  { %815 = vrot.lane.b32.xlu0 %v611_v37, %s1948_s30  ;;  %v530_v37 = vunpack.c.l.b16 %v40_v25  ;;  %v223_v4 = vpack.c.b16 %v1897_v55, %v1897_v55  ;;  %v658_v17 = vshll.u32 %v2162_v47, 16  ;;  %v373_v21 = vshrl.u32 %v2174_v54, 16 }
  0x24   :  { %424 = vrot.lane.b32.xlu1 %v263_v48, %s1948_s30  ;;  %v633_v48 = vor.u32 %v632_v35, %v628_v33  ;;  %v287_v8 = vsel %vm227_vm0, %v282_v56, %v286_v58  ;;  %v2189_v15 = vpack.c.b16 %v532_v3, %v532_v3  ;;  %v377_v23 = vrot.slane %v375_v6, 1  ;;  %v2209_v35 = vld [vmem:[%s2758_s0 + $0x104] sm:$0xff] }
  0x25   :  { %865 = vrot.lane.b32.xlu2 %v792_v53, %s1948_s30  ;;  %v2166_v50 = vpack.c.b16 %v530_v37, %v530_v37  ;;  %v200_v53 = vunpack.c.l.b16 %v2162_v47  ;;  %v380_v25 = vshll.u32 %v223_v4, 16  ;;  %v656_v36 = vshrl.u32 %v2162_v47, 16 }
  0x26   :  { %v638_v61 = vsel %vm227_vm0, %v633_v48, %v637_v49  ;;  %v660_v37 = vrot.slane %v658_v17, 1  ;;  %v303_v43 = vshll.u32 %v2201_v28, 16  ;;  %v224_v49 = vpack.c.b16 %v208_v39, %v208_v39 }
  0x27   :  { %v649_v2 = vshll.u32 %v2166_v50, 16  ;;  %v653_v33 = vshrl.u32 %v2166_v50, 16  ;;  %v382_v42 = vrot.slane %v380_v25, 1  ;;  %v216_v58 = vpack.c.b16 %v200_v53, %v200_v53 }
  0x28   :  { %v661_v55 = vor.u32 %v660_v37, %v656_v36  ;;  %v291_v59 = vshll.u32 %v2218_v46, 16  ;;  %v385_v6 = vshrl.u32 %v2209_v35, 16  ;;  %vm452_vm1 = vcmask 130048  }
  0x29   :  { %v651_v14 = vrot.slane %v649_v2, 1  ;;  %v289_v2 = vshrl.u32 %v2218_v46, 16  ;;  %v296_v3 = vshll.u32 %v216_v58, 16  ;;  %vm1114_vm2 = vcmask 261120  }
  0x2a   :  { %v293_v39 = vrot.slane %v291_v59, 1  ;;  %v667_v59 = vshrl.u32 %v2189_v15, 16  ;;  %vm1649_vm3 = vcmask 125952  }
  0x2b   :  { %867 = vrot.lane.b32.xlu0 %v793_v60, %s1948_s30  ;;  %v639_v60 = vshrl.u32 %v2145_v18, 16  ;;  %v298_v17 = vrot.slane %v296_v3, 1  ;;  %v55_v3 = vld [vmem:[%s2758_s0 + $0x9c] sm:$0x1] }
  0x2c   :  { %817 = vrot.lane.b32.xlu1 %v624_v63, %s1948_s30  ;;  %v646_v63 = vrot.slane %v644_v52, 1  ;;  %v387_v52 = vshll.u32 %v2209_v35, 16 }
  0x2d   :  { %819 = vrot.lane.b32.xlu2 %v625_v9, %s1948_s30 }
  0x2e   :  { %v647_v9 = vor.u32 %v646_v63, %v642_v62  ;;  %v305_v62 = vrot.slane %v303_v43, 1  ;;  %v2231_v63 = vld [vmem:[%s2759_s1 + $0x8] sm:$0xff]  ;;  %v389_v53 = vrot.slane %v387_v52, 1 }
  0x2f   :  { %1302 = vmatpush.bf16.msra.mxu1 %v2231_v63 }
  0x30   :  { %v652_v29 = vsel %vm227_vm0, %v647_v9, %v651_v14  ;;  %v294_v14 = vor.u32 %v293_v39, %v289_v2  ;;  %v390_v37 = vor.u32 %v389_v53, %v385_v6 }
  0x32   :  { %v299_v25 = vsel %vm227_vm0, %v294_v14, %v298_v17 }
  0x33   :  { %426 = vrot.lane.b32.xlu0 %v275_v34, %s1948_s30  ;;  %v1885_v34 = vunpack.c.l.b16 %v2195_v19 }
  0x34   :  { %869 = vrot.lane.b32.xlu1 %v806_v38, %s1948_s30  ;;  %v663_v38 = vshll.u32 %v2189_v15, 16 }
  0x35   :  { %871 = vrot.lane.b32.xlu2 %v807_v41, %s1948_s30  ;;  %v378_v41 = vor.u32 %v377_v23, %v373_v21  ;;  %v217_v48 = vpack.c.b16 %v1885_v34, %v1885_v34  ;;  %v2240_v21 = vld [vmem:[%s2759_s1] sm:$0xff]  ;;  %v2245_v23 = vld [vmem:[%s2758_s0 + $0x94] sm:$0xff]  }
  0x36   :  { %v665_v56 = vrot.slane %v663_v38, 1  ;;  %1303 = vmatpush.bf16.msra.mxu1 %v2240_v21  ;;  %v684_v14 = vshrl.u32 %v2245_v23, 16 }
  0x37   :  { %v308_v4 = vshll.u32 %v217_v48, 16 }
  0x38   :  { %v666_v9 = vsel %vm227_vm0, %v661_v55, %v665_v56 }
  0x39   :  { %v310_v36 = vrot.slane %v308_v4, 1  ;;  %v536_v4 = vunpack.c.l.b16 %v55_v3 }
  0x3b   :  { %821 = vrot.lane.b32.xlu0 %v638_v61, %s1948_s30  ;;  %v301_v61 = vshrl.u32 %v2201_v28, 16  ;;  %v2287_v53 = vpack.c.b16 %v536_v4, %v536_v4 }
  0x3c   :  { %823 = vrot.lane.b32.xlu1 %v639_v60, %s1948_s30  ;;  %v383_v60 = vsel %vm227_vm0, %v378_v41, %v382_v42  ;;  %v50_v41 = vld [vmem:[%s2758_s0 + $0x88] sm:$0x1] }
  0x3d   :  { %428 = vrot.lane.b32.xlu2 %v287_v8, %s1948_s30  ;;  %v392_v8 = vshll.u32 %v224_v49, 16  ;;  %v306_v34 = vor.u32 %v305_v62, %v301_v61  ;;  %v534_v48 = vunpack.c.l.b16 %v50_v41  ;;  %v2278_v62 = vld [vmem:[%s2759_s1 + $0x20] sm:$0xff]  ;;  %v2301_v41 = vld [vmem:[%s2758_s0 + $0x12c] sm:$0xff] }
  0x3f   :  { %v394_v38 = vrot.slane %v392_v8, 1  ;;  %v311_v49 = vsel %vm227_vm0, %v306_v34, %v310_v36  ;;  %v2272_v61 = vpack.c.b16 %v534_v48, %v534_v48  ;;  %v686_v8 = vshll.u32 %v2245_v23, 16 }
  0x41   :  { %v395_v52 = vsel %vm227_vm0, %v390_v37, %v394_v38  ;;  %v681_v6 = vshrl.u32 %v2272_v61, 16  ;;  %v688_v17 = vrot.slane %v686_v8, 1  ;;  %v695_v37 = vshrl.u32 %v2287_v53, 16 }
  0x42   :  { %v672_v38 = vshll.u32 %v2195_v19, 16  ;;  %v677_v48 = vshll.u32 %v2272_v61, 16 }
  0x43   :  { %825 = vrot.lane.b32.xlu0 %v652_v29, %s1948_s30  ;;  %v2252_v29 = vld [vmem:[%s2758_s0 + $0x8c] sm:$0xff] }
  0x44   :  { %827 = vrot.lane.b32.xlu1 %v653_v33, %s1948_s30  ;;  %v202_v33 = vunpack.c.l.b16 %v2245_v23  ;;  %v315_v43 = vshll.u32 %v2252_v29, 16  ;;  %v313_v55 = vshrl.u32 %v2252_v29, 16 }
  0x45   :  { %430 = vrot.lane.b32.xlu2 %v299_v25, %s1948_s30  ;;  %v691_v25 = vshll.u32 %v2287_v53, 16 }
  0x46   :  { %v218_v42 = vpack.c.b16 %v202_v33, %v202_v33  ;;  %v317_v56 = vrot.slane %v315_v43, 1  ;;  %v689_v33 = vor.u32 %v688_v17, %v684_v14  ;;  %v674_v43 = vrot.slane %v672_v38, 1  ;;  %v2327_v14 = vld [vmem:[%s2758_s0 + $0x118] sm:$0xff] }
  0x47   :  { %v693_v34 = vrot.slane %v691_v25, 1  ;;  %v1901_v17 = vunpack.c.l.b16 %v2090_v30  ;;  %v60_v25 = vld [vmem:[%s2758_s0 + $0xb0] sm:$0x1]  ;;  %v2345_v38 = vld [vmem:[%s2758_s0 + $0xbc] sm:$0xff]  }
  0x48   :  { %v320_v58 = vshll.u32 %v218_v42, 16  ;;  %v318_v2 = vor.u32 %v317_v56, %v313_v55  ;;  %v670_v42 = vshrl.u32 %v2195_v19, 16  ;;  %v1868_v55 = vld [vmem:[%s2759_s1 + $0x18] sm:$0xff] }
  0x49   :  { %v694_v36 = vsel %vm227_vm0, %v689_v33, %v693_v34  ;;  %1169 = vmatpush.bf16.msra.mxu0 %v1868_v55  ;;  %1911 = vmatpush.bf16.msra.mxu3 %v1868_v55  ;;  %v538_v33 = vunpack.c.l.b16 %v60_v25  ;;  %v225_v34 = vpack.c.b16 %v1901_v17, %v1901_v17 }
  0x4a   :  { %v322_v39 = vrot.slane %v320_v58, 1  ;;  %v675_v56 = vor.u32 %v674_v43, %v670_v42  ;;  %v679_v58 = vrot.slane %v677_v48, 1  ;;  %v2355_v48 = vld [vmem:[%s2758_s0 + $0xb4] sm:$0xff] }
  0x4b   :  { %444 = vrot.lane.b32.xlu0 %v383_v60, %s1948_s30  ;;  %v2269_v60 = vld [vmem:[%s2759_s1 + $0x28] sm:$0xff]  ;;  %v2349_v42 = vpack.c.b16 %v538_v33, %v538_v33  ;;  %v337_v17 = vshrl.u32 %v2355_v48, 16 }
  0x4c   :  { %829 = vrot.lane.b32.xlu1 %v666_v9, %s1948_s30  ;;  %1434 = vmatpush.bf16.msra.mxu2 %v2269_v60  ;;  %v323_v9 = vsel %vm227_vm0, %v318_v2, %v322_v39 }
  0x4d   :  { %831 = vrot.lane.b32.xlu2 %v667_v59, %s1948_s30  ;;  %v409_v59 = vshrl.u32 %v2301_v41, 16 }
  0x50   :  { %1435 = vmatpush.bf16.msra.mxu2 %v2278_v62 }
  0x53   :  { %432 = vrot.lane.b32.xlu0 %v311_v49, %s1948_s30  ;;  %v226_v49 = vpack.c.b16 %v210_v32, %v210_v32  ;;  %v680_v32 = vsel %vm227_vm0, %v675_v56, %v679_v58  ;;  %v404_v56 = vshll.u32 %v225_v34, 16 }
  0x54   :  { %446 = vrot.lane.b32.xlu1 %v395_v52, %s1948_s30  ;;  %v411_v52 = vshll.u32 %v2301_v41, 16 }
  0x55   :  { %v416_v2 = vshll.u32 %v226_v49, 16  ;;  %833 = vrot.lane.b32.xlu2 %v680_v32, %s1948_s30  ;;  %v204_v49 = vunpack.c.l.b16 %v2345_v38  ;;  %v406_v32 = vrot.slane %v404_v56, 1 }
  0x56   :  { %v413_v39 = vrot.slane %v411_v52, 1  ;;  %v397_v52 = vshrl.u32 %v2327_v14, 16 }
  0x57   :  { %v418_v3 = vrot.slane %v416_v2, 1  ;;  %v220_v2 = vpack.c.b16 %v204_v49, %v204_v49 }
  0x59   :  { %v344_v25 = vshll.u32 %v220_v2, 16  ;;  %v65_v2 = vld [vmem:[%s2758_s0 + $0xc4] sm:$0x1] }
  0x5b   :  { %835 = vrot.lane.b32.xlu0 %v681_v6, %s1948_s30  ;;  %v414_v6 = vor.u32 %v413_v39, %v409_v59 }
  0x5c   :  { %434 = vrot.lane.b32.xlu1 %v323_v9, %s1948_s30  ;;  %v1867_v9 = vld [vmem:[%s2759_s1 + $0x10] sm:$0xff] }
  0x5d   :  { %1170 = vmatpush.bf16.msra.mxu0 %v1867_v9  ;;  %1912 = vmatpush.bf16.msra.mxu3 %v1867_v9 }
  0x61   :  { %1913 = vmatpush.bf16.msrb.mxu3 %v2231_v63  ;;  %v705_v63 = vshll.u32 %v2349_v42, 16 }
  0x63   :  { %837 = vrot.lane.b32.xlu0 %v694_v36, %s1948_s30  ;;  %v399_v36 = vshll.u32 %v2327_v14, 16  ;;  %v707_v9 = vrot.slane %v705_v63, 1 }
  0x64   :  { %839 = vrot.lane.b32.xlu1 %v695_v37, %s1948_s30  ;;  %v2340_v37 = vld [vmem:[%s2758_s0 + $0xa8] sm:$0xff]  }
  0x65   :  { %v700_v43 = vshll.u32 %v2340_v37, 16  ;;  %v401_v55 = vrot.slane %v399_v36, 1  ;;  %v698_v58 = vshrl.u32 %v2340_v37, 16  ;;  %1914 = vmatpush.bf16.msrb.mxu3 %v2240_v21  ;;  %v2374_v21 = vld [vmem:[%s2758_s0 + $0xa0] sm:$0xff] }
  0x66   :  { %v327_v56 = vshll.u32 %v2374_v21, 16 }
  0x67   :  { %v423_v4 = vpop.permute.xlu2 %422  ;;  %v702_v59 = vrot.slane %v700_v43, 1  ;;  %v402_v39 = vor.u32 %v401_v55, %v397_v52  ;;  %v346_v43 = vrot.slane %v344_v25, 1 }
  0x68   :  { %v2319_v8 = vsel %vm452_vm1, %v1993_v7, %v423_v4  ;;  %v419_v7 = vsel %vm227_vm0, %v414_v6, %v418_v3  ;;  %v339_v3 = vshll.u32 %v2355_v48, 16 }
  0x69   :  { %1832 = vmatmul.msk.bf16.vlgmr.msra.gmra.mxu2 %vm1114_vm2, %v2319_v8  ;;  %v703_v6 = vor.u32 %v702_v59, %v698_v58  ;;  %v407_v33 = vsel %vm227_vm0, %v402_v39, %v406_v32  ;;  %v325_v58 = vshrl.u32 %v2374_v21, 16  ;;  %v329_v59 = vrot.slane %v327_v56, 1 }
  0x6a   :  { %v341_v34 = vrot.slane %v339_v3, 1  ;;  %448 = vrot.lane.b32.xlu2 %v407_v33, %s1948_s30  ;;  %v540_v3 = vunpack.c.l.b16 %v65_v2 }
  0x6b   :  { %450 = vrot.lane.b32.xlu0 %v419_v7, %s1948_s30  ;;  %v708_v36 = vsel %vm227_vm0, %v703_v6, %v707_v9  ;;  %v330_v39 = vor.u32 %v329_v59, %v325_v58  ;;  %v714_v9 = vshll.u32 %v2345_v38, 16 }
  0x6c   :  { %841 = vrot.lane.b32.xlu1 %v708_v36, %s1948_s30  ;;  %v342_v49 = vor.u32 %v341_v34, %v337_v17  ;;  %v2394_v17 = vld [vmem:[%s2758_s0 + $0xc8] sm:$0xff]  ;;  %v712_v34 = vshrl.u32 %v2345_v38, 16 }
  0x6d   :  { %v716_v36 = vrot.slane %v714_v9, 1 }
  0x6e   :  { %v347_v52 = vsel %vm227_vm0, %v342_v49, %v346_v43 }
  0x6f   :  { %v421_v4 = vpop.permute.xlu2 %420  ;;  %v717_v58 = vor.u32 %v716_v36, %v712_v34 }
  0x70   :  { %v454_v7 = vsel %vm452_vm1, %v2013_v20, %v421_v4  ;;  %v1889_v20 = vunpack.c.l.b16 %v2340_v37  ;;  %v2387_v4 = vld [vmem:[%s2758_s0 + $0xd0] sm:$0xff]  }
  0x71   :  { %1800 = vmatmul.msk.bf16.vlgmr.msra.gmra.mxu1 %vm1114_vm2, %v454_v7  ;;  %v1893_v25 = vunpack.c.l.b16 %v2387_v4  ;;  %v2398_v7 = vpack.c.b16 %v540_v3, %v540_v3 }
  0x72   :  { %v219_v55 = vpack.c.b16 %v1889_v20, %v1889_v20 }
  0x73   :  { %438 = vrot.lane.b32.xlu0 %v347_v52, %s1948_s30  ;;  %v221_v43 = vpack.c.b16 %v1893_v25, %v1893_v25  ;;  %v719_v52 = vshll.u32 %v2398_v7, 16 }
  0x74   :  { %v332_v63 = vshll.u32 %v219_v55, 16  ;;  %v351_v55 = vshll.u32 %v2394_v17, 16 }
  0x75   :  { %v721_v59 = vrot.slane %v719_v52, 1 }
  0x76   :  { %v334_v32 = vrot.slane %v332_v63, 1  ;;  %v349_v63 = vshrl.u32 %v2394_v17, 16 }
  0x78   :  { %v335_v6 = vsel %vm227_vm0, %v330_v39, %v334_v32  ;;  %v353_v39 = vrot.slane %v351_v55, 1  ;;  %v356_v32 = vshll.u32 %v221_v43, 16 }
  0x79   :  { %436 = vrot.lane.b32.xlu2 %v335_v6, %s1948_s30 }
  0x7a   :  { %v354_v6 = vor.u32 %v353_v39, %v349_v63  ;;  %v358_v9 = vrot.slane %v356_v32, 1  ;;  %v709_v63 = vshrl.u32 %v2349_v42, 16 }
  0x7d   :  { %v858_v33 = vpop.permute.xlu0 %857 }
  0x7e   :  { %v922_v49 = vsel %vm452_vm1, %v1975_v0, %v858_v33  ;;  %v810_v20 = vpop.permute.xlu1 %809  ;;  %v722_v0 = vsel %vm227_vm0, %v717_v58, %v721_v59  ;;  %v814_v58 = vpop.permute.xlu2 %813 }
  0x7f   :  { %v874_v56 = vsel %vm452_vm1, %v1985_v5, %v810_v20  ;;  %v1059_v2 = vshll.u32 %v922_v49, 16  ;;  %845 = vrot.lane.b32.xlu1 %v722_v0, %s1948_s30  ;;  %v359_v5 = vsel %vm227_vm0, %v354_v6, %v358_v9  ;;  %v728_v9 = vshll.u32 %v2387_v4, 16 }
  0x80   :  { %v939_v3 = vshll.u32 %v874_v56, 16  ;;  %v937_v34 = vshrl.u32 %v874_v56, 16  ;;  %440 = vrot.lane.b32.xlu0 %v359_v5, %s1948_s30  ;;  %v70_v56 = vld [vmem:[%s2758_s0 + $0xd8] sm:$0x1] }
  0x81   :  { %1801 = vmatmul.msk.bf16.gmra.mxu1 %vm1114_vm2, %v2319_v8  ;;  %v1061_v25 = vrot.slane %v1059_v2, 1  ;;  %v1057_v8 = vshrl.u32 %v922_v49, 16  ;;  %v542_v32 = vunpack.c.l.b16 %v70_v56  ;;  %v878_v49 = vsel %vm452_vm1, %v2000_v11, %v814_v58  ;;  %843 = vrot.lane.b32.xlu2 %v709_v63, %s1948_s30 }
  0x82   :  { %v941_v36 = vrot.slane %v939_v3, 1 }
  0x83   :  { %v1062_v2 = vor.u32 %v1061_v25, %v1057_v8  ;;  %v2431_v6 = vpack.c.b16 %v542_v32, %v542_v32  ;;  %v2437_v25 = vld [vmem:[%s2758_s0 + $0xdc] sm:$0xff] }
  0x84   :  { %v361_v58 = vshrl.u32 %v2437_v25, 16 }
  0x85   :  { %v860_v33 = vpop.permute.xlu0 %859 }
  0x86   :  { %v924_v20 = vsel %vm452_vm1, %v2002_v12, %v860_v33  ;;  %v812_v52 = vpop.permute.xlu1 %811  ;;  %v942_v12 = vor.u32 %v941_v36, %v937_v34  ;;  %v949_v34 = vshll.u32 %v878_v49, 16  ;;  %v726_v36 = vshrl.u32 %v2387_v4, 16 }
  0x87   :  { %v1063_v43 = vshll.u32 %v924_v20, 16  ;;  %v876_v55 = vsel %vm452_vm1, %v2006_v16, %v812_v52  ;;  %v2428_v16 = vld [vmem:[%s2758_s0 + $0xe4] sm:$0xff]   ;;  %v730_v20 = vrot.slane %v728_v9, 1  ;;  %v733_v52 = vshll.u32 %v2431_v6, 16 }
  0x88   :  { %v943_v59 = vshll.u32 %v876_v55, 16  ;;  %v206_v33 = vunpack.c.l.b16 %v2428_v16 }
  0x89   :  { %v1065_v39 = vrot.slane %v1063_v43, 1  ;;  %v731_v56 = vor.u32 %v730_v20, %v726_v36 }
  0x8a   :  { %v945_v3 = vrot.slane %v943_v59, 1  ;;  %v222_v55 = vpack.c.b16 %v206_v33, %v206_v33  ;;  %v363_v59 = vshll.u32 %v2437_v25, 16 }
  0x8b   :  { %v1066_v0 = vsel %vm227_vm0, %v1062_v2, %v1065_v39  ;;  %v735_v39 = vrot.slane %v733_v52, 1 }
  0x8c   :  { %v946_v11 = vsel %vm227_vm0, %v942_v12, %v945_v3  ;;  %1788 = vmatmul.msk.bf16.vlgmr.msra.gmra.mxu3 %vm1114_vm2, %v1066_v0  ;;  %v365_v32 = vrot.slane %v363_v59, 1  ;;  %v947_v12 = vshrl.u32 %v878_v49, 16  ;;  %v866_v3 = vpop.permute.xlu2 %865  ;;  %v368_v0 = vshll.u32 %v222_v55, 16  ;;  %v75_v59 = vld [vmem:[%s2758_s0 + $0xec] sm:$0x1] }
  0x8d   :  { %1776 = vmatmul.msk.bf16.vlgmr.msra.gmra.mxu0 %vm1114_vm2, %v946_v11  ;;  %v862_v5 = vpop.permute.xlu0 %861  ;;  %1915 = vmatpush.bf16.msra.mxu3 %v2269_v60  ;;  %v951_v60 = vrot.slane %v949_v34, 1 }
  0x8e   :  { %v926_v8 = vsel %vm452_vm1, %v2020_v27, %v862_v5  ;;  %v864_v43 = vpop.permute.xlu1 %863  ;;  %v736_v27 = vsel %vm227_vm0, %v731_v56, %v735_v39  ;;  %v366_v9 = vor.u32 %v365_v32, %v361_v58  ;;  %v370_v36 = vrot.slane %v368_v0, 1 }
  0x8f   :  { %v1069_v63 = vshll.u32 %v926_v8, 16  ;;  %v928_v2 = vsel %vm452_vm1, %v2034_v44, %v864_v43  ;;  %v1067_v11 = vshrl.u32 %v926_v8, 16  ;;  %849 = vrot.lane.b32.xlu1 %v736_v27, %s1948_s30  ;;  %v952_v52 = vor.u32 %v951_v60, %v947_v12 }
  0x90   :  { %v1073_v5 = vshll.u32 %v928_v2, 16  ;;  %v371_v44 = vsel %vm227_vm0, %v366_v9, %v370_v36  ;;  %v723_v58 = vshrl.u32 %v2398_v7, 16  ;;  %v742_v32 = vshll.u32 %v2428_v16, 16 }
  0x91   :  { %1916 = vmatpush.bf16.msra.mxu3 %v2278_v62  ;;  %v1071_v33 = vrot.slane %v1069_v63, 1  ;;  %442 = vrot.lane.b32.xlu0 %v371_v44, %s1948_s30  ;;  %v544_v63 = vunpack.c.l.b16 %v75_v59  ;;  %v930_v12 = vsel %vm452_vm1, %v2090_v30, %v866_v3  ;;  %v740_v60 = vshrl.u32 %v2428_v16, 16  ;;  %v98_v30 = vld [vmem:[%s2758_s0 + $0x148] sm:$0xf] }
  0x92   :  { %v1075_v34 = vrot.slane %v1073_v5, 1  ;;  %847 = vrot.lane.b32.xlu2 %v723_v58, %s1948_s30  ;;  %v744_v27 = vrot.slane %v742_v32, 1  ;;  %v1079_v5 = vshll.u32 %v930_v12, 16  ;;  %v1077_v59 = vshrl.u32 %v930_v12, 16 }
  0x93   :  { %v1072_v62 = vor.u32 %v1071_v33, %v1067_v11 }
  0x94   :  { %v820_v39 = vpop.permute.xlu2 %819 }
  0x95   :  { %v816_v20 = vpop.permute.xlu0 %815  ;;  %v1076_v2 = vsel %vm227_vm0, %v1072_v62, %v1075_v34  ;;  %v884_v33 = vsel %vm452_vm1, %v2083_v26, %v820_v39  ;;  %v1391_v26 = vunpack.c.l.b16 %v98_v30 }
  0x96   :  { %v880_v49 = vsel %vm452_vm1, %v2063_v1, %v816_v20  ;;  %v425_v43 = vpop.permute.xlu1 %424  ;;  %v745_v20 = vor.u32 %v744_v27, %v740_v60 }
  0x97   :  { %v953_v55 = vshll.u32 %v880_v49, 16  ;;  %v458_v8 = vsel %vm452_vm1, %v2049_v51, %v425_v43  ;;  %v2470_v51 = vpack.c.b16 %v544_v63, %v544_v63  ;;  %v2491_v49 = vld [vmem:[%s2758_s0 + $0x140] sm:$0xff]  ;;  %v963_v43 = vshll.u32 %v884_v33, 16 }
  0x98   :  { %1802 = vmatmul.msk.bf16.gmra.mxu1 %vm1114_vm2, %v458_v8  ;;  %1833 = vmatmul.msk.bf16.gmra.mxu2 %vm1114_vm2, %v458_v8  ;;  %v1396_v8 = vshll.u32 %v2491_v49, 16 }
  0x99   :  { %v955_v1 = vrot.slane %v953_v55, 1  ;;  %v747_v9 = vshll.u32 %v2470_v51, 16  ;;  %v1392_v55 = vpack.c.b16 %v1391_v26, %v1391_v26  ;;  %v965_v39 = vrot.slane %v963_v43, 1 }
  0x9a   :  { %v1398_v63 = vrot.slane %v1396_v8, 1 }
  0x9b   :  { %v956_v56 = vsel %vm227_vm0, %v952_v52, %v955_v1  ;;  %v749_v44 = vrot.slane %v747_v9, 1  ;;  %v1394_v1 = vshrl.u32 %v2491_v49, 16 }
  0x9c   :  { %1789 = vmatmul.msk.bf16.gmra.mxu3 %vm1114_vm2, %v1076_v2  ;;  %v872_v12 = vpop.permute.xlu2 %871 }
  0x9d   :  { %1777 = vmatmul.msk.bf16.gmra.mxu0 %vm1114_vm2, %v956_v56  ;;  %v868_v0 = vpop.permute.xlu0 %867  ;;  %v750_v62 = vsel %vm227_vm0, %v745_v20, %v749_v44  ;;  %v1401_v56 = vshll.u32 %v1392_v55, 16  ;;  %v1399_v27 = vor.u32 %v1398_v63, %v1394_v1 }
  0x9e   :  { %v818_v11 = vpop.permute.xlu1 %817  ;;  %v932_v3 = vsel %vm452_vm1, %v2080_v24, %v868_v0  ;;  %853 = vrot.lane.b32.xlu1 %v750_v62, %s1948_s30  ;;  %v1081_v24 = vrot.slane %v1079_v5, 1 }
  0x9f   :  { %v882_v36 = vsel %vm452_vm1, %v2039_v45, %v818_v11  ;;  %v1083_v58 = vshll.u32 %v932_v3, 16  ;;  %v1403_v9 = vrot.slane %v1401_v56, 1 }
  0xa0   :  { %v959_v52 = vshll.u32 %v882_v36, 16  ;;  %v957_v45 = vshrl.u32 %v882_v36, 16  ;;  %v1082_v33 = vor.u32 %v1081_v24, %v1077_v59  ;;  %v737_v36 = vshrl.u32 %v2431_v6, 16 }
  0xa1   :  { %v1085_v11 = vrot.slane %v1083_v58, 1  ;;  %v1404_v5 = vsel %vm227_vm0, %v1399_v27, %v1403_v9 }
  0xa2   :  { %v961_v34 = vrot.slane %v959_v52, 1  ;;  %1405 = vrot.lane.b32.xlu0 %v1404_v5, %s1948_s30  ;;  %851 = vrot.lane.b32.xlu2 %v737_v36, %s1948_s30 }
  0xa4   :  { %v962_v32 = vor.u32 %v961_v34, %v957_v45  ;;  %v936_v45 = vsel %vm452_vm1, %v2119_v57, %v872_v12  ;;  %v429_v58 = vpop.permute.xlu2 %428  ;;  %v751_v57 = vshrl.u32 %v2470_v51, 16 }
  0xa5   :  { %v427_v2 = vpop.permute.xlu0 %426  ;;  %v1093_v24 = vshll.u32 %v936_v45, 16  ;;  %v462_v1 = vsel %vm452_vm1, %v2141_v13, %v429_v58 }
  0xa6   :  { %v460_v0 = vsel %vm452_vm1, %v2110_v40, %v427_v2  ;;  %v870_v60 = vpop.permute.xlu1 %869  ;;  %v966_v20 = vsel %vm227_vm0, %v962_v32, %v965_v39  ;;  %v1086_v40 = vsel %vm227_vm0, %v1082_v33, %v1085_v11 }
  0xa7   :  { %v934_v44 = vsel %vm452_vm1, %v2077_v22, %v870_v60  ;;  %v1095_v2 = vrot.slane %v1093_v24, 1 }
  0xa8   :  { %1803 = vmatmul.msk.bf16.gmra.mxu1 %vm1114_vm2, %v460_v0  ;;  %1834 = vmatmul.msk.bf16.gmra.mxu2 %vm1114_vm2, %v460_v0  ;;  %v1089_v26 = vshll.u32 %v934_v44, 16  ;;  %v1087_v22 = vshrl.u32 %v934_v44, 16 }
  0xaa   :  { %v1091_v59 = vrot.slane %v1089_v26, 1  ;;  %855 = vrot.lane.b32.xlu2 %v751_v57, %s1948_s30 }
  0xac   :  { %1790 = vmatmul.msk.bf16.gmra.mxu3 %vm1114_vm2, %v1086_v40  ;;  %v1092_v56 = vor.u32 %v1091_v59, %v1087_v22  ;;  %v431_v9 = vpop.permute.xlu2 %430 }
  0xad   :  { %1778 = vmatmul.msk.bf16.gmra.mxu0 %vm1114_vm2, %v966_v20  ;;  %v822_v30 = vpop.permute.xlu0 %821  ;;  %v464_v5 = vsel %vm452_vm1, %v2218_v46, %v431_v9 }
  0xae   :  { %v886_v3 = vsel %vm452_vm1, %v2095_v31, %v822_v30  ;;  %v824_v52 = vpop.permute.xlu1 %823  ;;  %v1096_v32 = vsel %vm227_vm0, %v1092_v56, %v1095_v2 }
  0xaf   :  { %v969_v43 = vshll.u32 %v886_v3, 16  ;;  %v888_v62 = vsel %vm452_vm1, %v2145_v18, %v824_v52  ;;  %v967_v34 = vshrl.u32 %v886_v3, 16 }
  0xb0   :  { %v973_v8 = vshll.u32 %v888_v62, 16 }
  0xb1   :  { %v971_v55 = vrot.slane %v969_v43, 1 }
  0xb2   :  { %v975_v63 = vrot.slane %v973_v8, 1 }
  0xb3   :  { %v972_v31 = vor.u32 %v971_v55, %v967_v34 }
  0xb4   :  { %v832_v30 = vpop.permute.xlu2 %831 }
  0xb5   :  { %v976_v18 = vsel %vm227_vm0, %v972_v31, %v975_v63  ;;  %v826_v39 = vpop.permute.xlu0 %825  ;;  %v896_v52 = vsel %vm452_vm1, %v2189_v15, %v832_v30 }
  0xb6   :  { %v890_v13 = vsel %vm452_vm1, %v2135_v10, %v826_v39  ;;  %v828_v0 = vpop.permute.xlu1 %827  ;;  %v993_v62 = vshll.u32 %v896_v52, 16 }
  0xb7   :  { %v979_v60 = vshll.u32 %v890_v13, 16  ;;  %v892_v27 = vsel %vm452_vm1, %v2166_v50, %v828_v0  ;;  %v977_v11 = vshrl.u32 %v890_v13, 16 }
  0xb8   :  { %1804 = vmatmul.msk.bf16.gmra.mxu1 %vm1114_vm2, %v462_v1  ;;  %1835 = vmatmul.msk.bf16.gmra.mxu2 %vm1114_vm2, %v462_v1  ;;  %v983_v12 = vshll.u32 %v892_v27, 16  ;;  %v995_v8 = vrot.slane %v993_v62, 1 }
  0xb9   :  { %v981_v33 = vrot.slane %v979_v60, 1 }
  0xba   :  { %v985_v40 = vrot.slane %v983_v12, 1 }
  0xbb   :  { %v982_v20 = vor.u32 %v981_v33, %v977_v11 }
  0xbc   :  { %1791 = vmatmul.msk.bf16.gmra.mxu3 %vm1114_vm2, %v1096_v32  ;;  %v834_v58 = vpop.permute.xlu2 %833 }
  0xbd   :  { %1779 = vmatmul.msk.bf16.gmra.mxu0 %vm1114_vm2, %v976_v18  ;;  %v445_v36 = vpop.permute.xlu0 %444  ;;  %v986_v50 = vsel %vm227_vm0, %v982_v20, %v985_v40 }
  0xbe   :  { %v2537_v10 = vsel %vm452_vm1, %v2174_v54, %v445_v36  ;;  %v830_v44 = vpop.permute.xlu1 %829 }
  0xbf   :  { %v894_v46 = vsel %vm452_vm1, %v2162_v47, %v830_v44 }
  0xc0   :  { %v989_v3 = vshll.u32 %v894_v46, 16  ;;  %v987_v43 = vshrl.u32 %v894_v46, 16 }
  0xc2   :  { %v991_v54 = vrot.slane %v989_v3, 1 }
  0xc4   :  { %v992_v55 = vor.u32 %v991_v54, %v987_v43  ;;  %v449_v2 = vpop.permute.xlu2 %448 }
  0xc5   :  { %v433_v26 = vpop.permute.xlu0 %432 }
  0xc6   :  { %v466_v45 = vsel %vm452_vm1, %v2201_v28, %v433_v26  ;;  %v447_v34 = vpop.permute.xlu1 %446  ;;  %v996_v15 = vsel %vm227_vm0, %v992_v55, %v995_v8  ;;  %v898_v28 = vsel %vm452_vm1, %v2195_v19, %v834_v58  ;;  %v2569_v19 = vsel %vm452_vm1, %v2327_v14, %v449_v2  ;;  %v2603_v8 = vld [vmem:[%s2760_s2] ss:$0 sm:$0xff]  ;;  %s1949_s2 = smov [#allocation2]  }
  0xc7   :  { %v2553_v47 = vsel %vm452_vm1, %v2209_v35, %v447_v34  ;;  %v999_v59 = vshll.u32 %v898_v28, 16  ;;  %v997_v31 = vshrl.u32 %v898_v28, 16  ;;  %s1686_s19 = sshll.u32 %s1949_s2, 4  ;;  %s1687_s19 = int_to_ptr.vmem [resolvable:$true] %s1686_s19 }
  0xc8   :  { %1805 = vmatmul.msk.bf16.gmra.mxu1 %vm1114_vm2, %v464_v5  ;;  %1836 = vmatmul.msk.bf16.gmra.mxu2 %vm1114_vm2, %v464_v5 }
  0xc9   :  { %v1001_v35 = vrot.slane %v999_v59, 1 }
  0xcb   :  { %v1002_v57 = vor.u32 %v1001_v35, %v997_v31 }
  0xcc   :  { %1812 = vmatmul.msk.bf16.vlgmr.msrb.gmra.mxu3 %vm1114_vm2, %v2537_v10 }
  0xcd   :  { %1780 = vmatmul.msk.bf16.gmra.mxu0 %vm1114_vm2, %v986_v50  ;;  %v836_v22 = vpop.permute.xlu0 %835 }
  0xce   :  { %v900_v24 = vsel %vm452_vm1, %v2272_v61, %v836_v22  ;;  %v435_v1 = vpop.permute.xlu1 %434 }
  0xcf   :  { %v1003_v63 = vshll.u32 %v900_v24, 16  ;;  %v468_v56 = vsel %vm452_vm1, %v2252_v29, %v435_v1 }
  0xd1   :  { %v1005_v18 = vrot.slane %v1003_v63, 1 }
  0xd3   :  { %v1006_v61 = vsel %vm227_vm0, %v1002_v57, %v1005_v18  ;;  %v437_v27 = vpop.permute.xlu2 %436 }
  0xd4   :  { %v470_v33 = vsel %vm452_vm1, %v2374_v21, %v437_v27 }
  0xd5   :  { %v838_v39 = vpop.permute.xlu0 %837 }
  0xd6   :  { %v902_v29 = vsel %vm452_vm1, %v2245_v23, %v838_v39  ;;  %v840_v32 = vpop.permute.xlu1 %839 }
  0xd7   :  { %v1009_v0 = vshll.u32 %v902_v29, 16  ;;  %v904_v60 = vsel %vm452_vm1, %v2287_v53, %v840_v32  ;;  %v1007_v14 = vshrl.u32 %v902_v29, 16 }
  0xd8   :  { %1806 = vmatmul.msk.bf16.gmra.mxu1 %vm1114_vm2, %v466_v45  ;;  %1837 = vmatmul.msk.bf16.gmra.mxu2 %vm1114_vm2, %v466_v45  ;;  %v1013_v11 = vshll.u32 %v904_v60, 16 }
  0xd9   :  { %v1011_v9 = vrot.slane %v1009_v0, 1 }
  0xda   :  { %v1015_v36 = vrot.slane %v1013_v11, 1 }
  0xdb   :  { %v1012_v5 = vor.u32 %v1011_v9, %v1007_v14  ;;  %v844_v21 = vpop.permute.xlu2 %843 }
  0xdc   :  { %1813 = vmatmul.msk.bf16.gmra.mxu3 %vm1114_vm2, %v2553_v47  ;;  %v908_v46 = vsel %vm452_vm1, %v2349_v42, %v844_v21 }
  0xdd   :  { %1781 = vmatmul.msk.bf16.gmra.mxu0 %vm1114_vm2, %v996_v15  ;;  %v451_v12 = vpop.permute.xlu0 %450  ;;  %v1016_v44 = vsel %vm227_vm0, %v1012_v5, %v1015_v36 }
  0xde   :  { %v842_v23 = vpop.permute.xlu1 %841  ;;  %v2585_v40 = vsel %vm452_vm1, %v2301_v41, %v451_v12  ;;  %v1023_v41 = vshll.u32 %v908_v46, 16 }
  0xdf   :  { %v906_v53 = vsel %vm452_vm1, %v2340_v37, %v842_v23 }
  0xe0   :  { %v1019_v50 = vshll.u32 %v906_v53, 16  ;;  %v1017_v30 = vshrl.u32 %v906_v53, 16  ;;  %v1025_v54 = vrot.slane %v1023_v41, 1 }
  0xe2   :  { %v1021_v3 = vrot.slane %v1019_v50, 1 }
  0xe4   :  { %v1022_v43 = vor.u32 %v1021_v3, %v1017_v30 }
  0xe5   :  { %v439_v52 = vpop.permute.xlu0 %438 }
  0xe6   :  { %v472_v37 = vsel %vm452_vm1, %v2355_v48, %v439_v52  ;;  %v1026_v55 = vsel %vm227_vm0, %v1022_v43, %v1025_v54 }
  0xe8   :  { %1807 = vmatmul.msk.bf16.gmra.mxu1 %vm1114_vm2, %v468_v56  ;;  %1838 = vmatmul.msk.bf16.gmra.mxu2 %vm1114_vm2, %v468_v56 }
  0xec   :  { %1814 = vmatmul.msk.bf16.gmra.mxu3 %vm1114_vm2, %v2569_v19  ;;  %v1437_v45 = vpop.f32.mrf.mxu2  ;;  %v848_v58 = vpop.permute.xlu2 %847 }
  0xed   :  { %1782 = vmatmul.msk.bf16.gmra.mxu0 %vm1114_vm2, %v1006_v61  ;;  %v912_v1 = vsel %vm452_vm1, %v2398_v7, %v848_v58 }
  0xee   :  { %v1305_v13 = vpop.f32.mrf.mxu1 }
  0xf1   :  { %v846_v62 = vpop.permute.xlu1 %845 }
  0xf2   :  { %v910_v48 = vsel %vm452_vm1, %v2345_v38, %v846_v62  ;;  %v441_v56 = vpop.permute.xlu0 %440 }
  0xf3   :  { %v1029_v22 = vshll.u32 %v910_v48, 16  ;;  %v1027_v38 = vshrl.u32 %v910_v48, 16  ;;  %v474_v29 = vsel %vm452_vm1, %v2394_v17, %v441_v56 }
  0xf4   :  { %v1439_v57 = vpop.f32.mrf.mxu2 }
  0xf5   :  { %v1031_v63 = vrot.slane %v1029_v22, 1 }
  0xf6   :  { %v1307_v20 = vpop.f32.mrf.mxu1 }
  0xf7   :  { %v1032_v32 = vor.u32 %v1031_v63, %v1027_v38 }
  0xf8   :  { %1808 = vmatmul.msk.bf16.gmra.mxu1 %vm1114_vm2, %v470_v33  ;;  %1839 = vmatmul.msk.bf16.gmra.mxu2 %vm1114_vm2, %v470_v33 }
  0xfc   :  { %1815 = vmatmul.msk.bf16.gmra.mxu3 %vm1114_vm2, %v2585_v40  ;;  %v852_v5 = vpop.permute.xlu2 %851 }
  0xfd   :  { %1783 = vmatmul.msk.bf16.gmra.mxu0 %vm1114_vm2, %v1016_v44  ;;  %v916_v21 = vsel %vm452_vm1, %v2431_v6, %v852_v5 }
  0xfe   :  { %v1310_v26 = vpop.f32.mrf.mxu1  ;;  %v1043_v3 = vshll.u32 %v916_v21, 16 }
 0x101   :  { %v850_v60 = vpop.permute.xlu1 %849 }
 0x102   :  { %v914_v17 = vsel %vm452_vm1, %v2387_v4, %v850_v60 }
 0x103   :  { %v1037_v46 = vshrl.u32 %v914_v17, 16 }
 0x106   :  { %v1312_v15 = vpop.f32.mrf.mxu1 }
 0x108   :  { %1809 = vmatmul.msk.bf16.gmra.mxu1 %vm1114_vm2, %v472_v37  ;;  %1840 = vmatmul.msk.bf16.gmra.mxu2 %vm1114_vm2, %v472_v37 }
 0x10a   :  { %v1172_v34 = vpop.f32.mrf.mxu0 }
 0x10b   :  { %v1306_v42 = vadd.f32 %v1305_v13, %v1172_v34 }
 0x10c   :  { %1844 = vmatmul.msk.bf16.vlgmr.msra.gmra.mxu3 %vm1114_vm2, %v2553_v47  ;;  %v1033_v47 = vshll.u32 %v912_v1, 16 }
 0x10d   :  { %v1517_v28 = vadd.f32 %v1437_v45, %v1306_v42  ;;  %1784 = vmatmul.msk.bf16.gmra.mxu0 %vm1114_vm2, %v1026_v55  ;;  %v1045_v45 = vrot.slane %v1043_v3, 1 }
 0x10e   :  { %v1035_v13 = vrot.slane %v1033_v47, 1 }
 0x10f   :  { %v1553_v59 = vadd.f32 %v2603_v8, %v1517_v28  ;;  %v2611_v24 = vpop.f32.mrf.mxu3 }
 0x110   :  { %v1036_v9 = vsel %vm227_vm0, %v1032_v32, %v1035_v13  ;;  %v854_v55 = vpop.permute.xlu1 %853 }
 0x111   :  { %v1585_v31 = vmax.f32 %v1553_v59, 0.0  ;;  %v856_v59 = vpop.permute.xlu2 %855 }
 0x112   :  { %v1174_v35 = vpop.f32.mrf.mxu0  ;;  %v920_v56 = vsel %vm452_vm1, %v2470_v51, %v856_v59 }
 0x113   :  { %v1617_v2 = vpack.c.bf16 %v1585_v31, %v1585_v31  ;;  %v1308_v18 = vadd.f32 %v1307_v20, %v1174_v35  ;;  %v1039_v20 = vshll.u32 %v914_v17, 16 }
 0x115   :  { %1650 = vst.msk [vmem:[#allocation2] sm:$0xf] %vm1649_vm3, %v1617_v2  ;;  %v1518_v39 = vadd.f32 %v1439_v57, %v1308_v18  ;;  %v1315_v61 = vpop.f32.mrf.mxu1  ;;  %v1041_v30 = vrot.slane %v1039_v20, 1 }
 0x117   :  { %v1554_v7 = vadd.f32 %v2603_v8, %v1518_v39  ;;  %v2619_v0 = vpop.f32.mrf.mxu3  ;;  %v1042_v62 = vor.u32 %v1041_v30, %v1037_v46 }
 0x118   :  { %1810 = vmatmul.msk.bf16.gmra.mxu1 %vm1114_vm2, %v474_v29  ;;  %1841 = vmatmul.msk.bf16.gmra.mxu2 %vm1114_vm2, %v474_v29 }
 0x119   :  { %v1586_v27 = vmax.f32 %v1554_v7, 0.0  ;;  %v1046_v58 = vsel %vm227_vm0, %v1042_v62, %v1045_v45 }
 0x11a   :  { %v1177_v14 = vpop.f32.mrf.mxu0 }
 0x11b   :  { %v1618_v11 = vpack.c.bf16 %v1586_v27, %v1586_v27  ;;  %v1311_v33 = vadd.f32 %v1310_v26, %v1177_v14  ;;  %v1442_v12 = vpop.f32.mrf.mxu2 }
 0x11c   :  { %1845 = vmatmul.msk.bf16.gmra.mxu3 %vm1114_vm2, %v2569_v19  ;;  %v443_v19 = vpop.permute.xlu0 %442 }
 0x11d   :  { %1651 = vst.msk [vmem:[#allocation2 + $0x4] sm:$0xf] %vm1649_vm3, %v1618_v11  ;;  %v1519_v36 = vadd.f32 %v1442_v12, %v1311_v33  ;;  %1785 = vmatmul.msk.bf16.gmra.mxu0 %vm1114_vm2, %v1036_v9  ;;  %v1317_v23 = vpop.f32.mrf.mxu1  ;;  %v476_v54 = vsel %vm452_vm1, %v2437_v25, %v443_v19  ;;  %v918_v25 = vsel %vm452_vm1, %v2428_v16, %v854_v55 }
 0x11e   :  { %v1049_v35 = vshll.u32 %v918_v25, 16  ;;  %v1047_v2 = vshrl.u32 %v918_v25, 16 }
 0x11f   :  { %v1555_v53 = vadd.f32 %v2603_v8, %v1519_v36  ;;  %v2631_v44 = vpop.f32.mrf.mxu3 }
 0x120   :  { %v1051_v57 = vrot.slane %v1049_v35, 1 }
 0x121   :  { %v1587_v50 = vmax.f32 %v1555_v53, 0.0 }
 0x122   :  { %v1179_v4 = vpop.f32.mrf.mxu0  ;;  %v1052_v13 = vor.u32 %v1051_v57, %v1047_v2 }
 0x123   :  { %v1619_v52 = vpack.c.bf16 %v1587_v50, %v1587_v50  ;;  %v1313_v41 = vadd.f32 %v1312_v15, %v1179_v4  ;;  %v1444_v26 = vpop.f32.mrf.mxu2 }
 0x124   :  { %v1406_v60 = vpop.permute.xlu0 %1405 }
 0x125   :  { %1652 = vst.msk [vmem:[#allocation2 + $0x8] sm:$0xf] %vm1649_vm3, %v1619_v52  ;;  %v1520_v37 = vadd.f32 %v1444_v26, %v1313_v41  ;;  %v1320_v43 = vpop.f32.mrf.mxu1  ;;  %v1408_v9 = vsel %vm452_vm1, %v2491_v49, %v1406_v60 }
 0x127   :  { %v1556_v6 = vadd.f32 %v2603_v8, %v1520_v37  ;;  %v2639_v34 = vpop.f32.mrf.mxu3 }
 0x128   :  { %1811 = vmatmul.msk.bf16.gmra.mxu1 %vm1114_vm2, %v476_v54  ;;  %1842 = vmatmul.msk.bf16.gmra.mxu2 %vm1114_vm2, %v476_v54 }
 0x129   :  { %v1588_v42 = vmax.f32 %v1556_v6, 0.0 }
 0x12a   :  { %v1182_v48 = vpop.f32.mrf.mxu0 }
 0x12b   :  { %v1620_v15 = vpack.c.bf16 %v1588_v42, %v1588_v42  ;;  %v1316_v28 = vadd.f32 %v1315_v61, %v1182_v48  ;;  %v1447_v22 = vpop.f32.mrf.mxu2 }
 0x12c   :  { %1846 = vmatmul.msk.bf16.gmra.mxu3 %vm1114_vm2, %v2585_v40  ;;  %v1053_v40 = vshll.u32 %v920_v56, 16 }
 0x12d   :  { %1653 = vst.msk [vmem:[#allocation2 + $0xc] sm:$0xf] %vm1649_vm3, %v1620_v15  ;;  %v1521_v1 = vadd.f32 %v1447_v22, %v1316_v28  ;;  %1786 = vmatmul.msk.bf16.gmra.mxu0 %vm1114_vm2, %v1046_v58  ;;  %v1322_v31 = vpop.f32.mrf.mxu1 }
 0x12e   :  { %v1055_v7 = vrot.slane %v1053_v40, 1 }
 0x12f   :  { %v1557_v38 = vadd.f32 %v2603_v8, %v1521_v1  ;;  %v2651_v63 = vpop.f32.mrf.mxu3 }
 0x130   :  { %v1056_v33 = vsel %vm227_vm0, %v1052_v13, %v1055_v7 }
 0x131   :  { %v1589_v47 = vmax.f32 %v1557_v38, 0.0 }
 0x132   :  { %v1184_v16 = vpop.f32.mrf.mxu0 }
 0x133   :  { %v1621_v18 = vpack.c.bf16 %v1589_v47, %v1589_v47  ;;  %v1318_v39 = vadd.f32 %v1317_v23, %v1184_v16  ;;  %v1449_v61 = vpop.f32.mrf.mxu2 }
 0x135   :  { %1654 = vst.msk [vmem:[#allocation2 + $0x10] sm:$0xf] %vm1649_vm3, %v1621_v18  ;;  %v1522_v29 = vadd.f32 %v1449_v61, %v1318_v39  ;;  %v1325_v32 = vpop.f32.mrf.mxu1 }
 0x137   :  { %v1558_v27 = vadd.f32 %v2603_v8, %v1522_v29  ;;  %v2657_v14 = vpop.f32.mrf.mxu3 }
 0x138   :  { %1843 = vmatmul.msk.bf16.gmra.mxu2 %vm1114_vm2, %v2537_v10 }
 0x139   :  { %v1590_v51 = vmax.f32 %v1558_v27, 0.0 }
 0x13a   :  { %v1187_v11 = vpop.f32.mrf.mxu0 }
 0x13b   :  { %v1622_v12 = vpack.c.bf16 %v1590_v51, %v1590_v51  ;;  %v1321_v17 = vadd.f32 %v1320_v43, %v1187_v11  ;;  %v1452_v5 = vpop.f32.mrf.mxu2 }
 0x13c   :  { %1847 = vmatmul.msk.bf16.gmra.mxu3 %vm1114_vm2, %v1408_v9 }
 0x13d   :  { %1655 = vst.msk [vmem:[#allocation2 + $0x14] sm:$0xf] %vm1649_vm3, %v1622_v12  ;;  %v1523_v36 = vadd.f32 %v1452_v5, %v1321_v17  ;;  %1787 = vmatmul.msk.bf16.gmra.mxu0 %vm1114_vm2, %v1056_v33  ;;  %v1327_v23 = vpop.f32.mrf.mxu1 }
 0x13f   :  { %v1559_v10 = vadd.f32 %v2603_v8, %v1523_v36  ;;  %v2668_v20 = vpop.f32.mrf.mxu3 }
 0x141   :  { %v1591_v53 = vmax.f32 %v1559_v10, 0.0 }
 0x142   :  { %v1189_v49 = vpop.f32.mrf.mxu0 }
 0x143   :  { %v1623_v21 = vpack.c.bf16 %v1591_v53, %v1591_v53  ;;  %v1323_v50 = vadd.f32 %v1322_v31, %v1189_v49  ;;  %v1454_v4 = vpop.f32.mrf.mxu2 }
 0x145   :  { %1656 = vst.msk [vmem:[#allocation2 + $0x18] sm:$0xf] %vm1649_vm3, %v1623_v21  ;;  %v1524_v46 = vadd.f32 %v1454_v4, %v1323_v50  ;;  %v1330_v30 = vpop.f32.mrf.mxu1 }
 0x147   :  { %v1560_v19 = vadd.f32 %v2603_v8, %v1524_v46  ;;  %v2672_v3 = vpop.f32.mrf.mxu3 }
 0x149   :  { %v1592_v52 = vmax.f32 %v1560_v19, 0.0 }
 0x14a   :  { %v1192_v41 = vpop.f32.mrf.mxu0 }
 0x14b   :  { %v1624_v26 = vpack.c.bf16 %v1592_v52, %v1592_v52  ;;  %v1326_v37 = vadd.f32 %v1325_v32, %v1192_v41  ;;  %v1457_v43 = vpop.f32.mrf.mxu2 }
 0x14d   :  { %1657 = vst.msk [vmem:[#allocation2 + $0x1c] sm:$0xf] %vm1649_vm3, %v1624_v26  ;;  %v1525_v54 = vadd.f32 %v1457_v43, %v1326_v37  ;;  %v1332_v62 = vpop.f32.mrf.mxu1 }
 0x14f   :  { %v1561_v45 = vadd.f32 %v2603_v8, %v1525_v54  ;;  %v2676_v6 = vpop.f32.mrf.mxu3 }
 0x151   :  { %v1593_v55 = vmax.f32 %v1561_v45, 0.0 }
 0x152   :  { %v1194_v42 = vpop.f32.mrf.mxu0 }
 0x153   :  { %v1625_v48 = vpack.c.bf16 %v1593_v55, %v1593_v55  ;;  %v1328_v58 = vadd.f32 %v1327_v23, %v1194_v42  ;;  %v1459_v15 = vpop.f32.mrf.mxu2 }
 0x155   :  { %1658 = vst.msk [vmem:[#allocation2 + $0x20] sm:$0xf] %vm1649_vm3, %v1625_v48  ;;  %v1526_v28 = vadd.f32 %v1459_v15, %v1328_v58  ;;  %v1335_v22 = vpop.f32.mrf.mxu1 }
 0x157   :  { %v1562_v25 = vadd.f32 %v2603_v8, %v1526_v28  ;;  %v2680_v59 = vpop.f32.mrf.mxu3 }
 0x159   :  { %v1594_v1 = vmax.f32 %v1562_v25, 0.0 }
 0x15a   :  { %v1197_v31 = vpop.f32.mrf.mxu0 }
 0x15b   :  { %v1626_v35 = vpack.c.bf16 %v1594_v1, %v1594_v1  ;;  %v1331_v38 = vadd.f32 %v1330_v30, %v1197_v31  ;;  %v1462_v56 = vpop.f32.mrf.mxu2 }
 0x15d   :  { %1659 = vst.msk [vmem:[#allocation2 + $0x24] sm:$0xf] %vm1649_vm3, %v1626_v35  ;;  %v1527_v47 = vadd.f32 %v1462_v56, %v1331_v38  ;;  %v1337_v16 = vpop.f32.mrf.mxu1 }
 0x15f   :  { %v1563_v2 = vadd.f32 %v2603_v8, %v1527_v47  ;;  %v2684_v57 = vpop.f32.mrf.mxu3 }
 0x161   :  { %v1595_v40 = vmax.f32 %v1563_v2, 0.0 }
 0x162   :  { %v1199_v18 = vpop.f32.mrf.mxu0 }
 0x163   :  { %v1627_v39 = vpack.c.bf16 %v1595_v40, %v1595_v40  ;;  %v1333_v61 = vadd.f32 %v1332_v62, %v1199_v18  ;;  %v1464_v29 = vpop.f32.mrf.mxu2 }
 0x165   :  { %1660 = vst.msk [vmem:[#allocation2 + $0x28] sm:$0xf] %vm1649_vm3, %v1627_v39  ;;  %v1528_v32 = vadd.f32 %v1464_v29, %v1333_v61  ;;  %v1340_v60 = vpop.f32.mrf.mxu1 }
 0x167   :  { %v1564_v13 = vadd.f32 %v2603_v8, %v1528_v32  ;;  %v2688_v7 = vpop.f32.mrf.mxu3 }
 0x169   :  { %v1596_v27 = vmax.f32 %v1564_v13, 0.0 }
 0x16a   :  { %v1202_v51 = vpop.f32.mrf.mxu0 }
 0x16b   :  { %v1628_v9 = vpack.c.bf16 %v1596_v27, %v1596_v27  ;;  %v1336_v11 = vadd.f32 %v1335_v22, %v1202_v51  ;;  %v1467_v33 = vpop.f32.mrf.mxu2 }
 0x16d   :  { %1661 = vst.msk [vmem:[#allocation2 + $0x2c] sm:$0xf] %vm1649_vm3, %v1628_v9  ;;  %v1529_v12 = vadd.f32 %v1467_v33, %v1336_v11  ;;  %v1342_v23 = vpop.f32.mrf.mxu1  ;;  %v1368_v11 = vadd.f32 %v2680_v59, %v2619_v0  ;;  %v1371_v0 = vadd.f32 %v2684_v57, %v2631_v44  ;;  %v1373_v44 = vadd.f32 %v2688_v7, %v2639_v34 }
 0x16f   :  { %v1565_v17 = vadd.f32 %v2603_v8, %v1529_v12  ;;  %v2692_v5 = vpop.f32.mrf.mxu3 }
 0x170   :  { %v1376_v34 = vadd.f32 %v2692_v5, %v2651_v63 }
 0x171   :  { %v1597_v36 = vmax.f32 %v1565_v17, 0.0 }
 0x172   :  { %v1204_v10 = vpop.f32.mrf.mxu0 }
 0x173   :  { %v1629_v53 = vpack.c.bf16 %v1597_v36, %v1597_v36  ;;  %v1338_v49 = vadd.f32 %v1337_v16, %v1204_v10  ;;  %v1469_v21 = vpop.f32.mrf.mxu2  ;;  %v1366_v16 = vadd.f32 %v2676_v6, %v2611_v24 }
 0x175   :  { %1662 = vst.msk [vmem:[#allocation2 + $0x30] sm:$0xf] %vm1649_vm3, %v1629_v53  ;;  %v1530_v50 = vadd.f32 %v1469_v21, %v1338_v49  ;;  %v1345_v37 = vpop.f32.mrf.mxu1 }
 0x177   :  { %v1566_v4 = vadd.f32 %v2603_v8, %v1530_v50  ;;  %v2696_v46 = vpop.f32.mrf.mxu3 }
 0x178   :  { %v1378_v63 = vadd.f32 %v2696_v46, %v2657_v14 }
 0x179   :  { %v1598_v30 = vmax.f32 %v1566_v4, 0.0 }
 0x17a   :  { %v1207_v19 = vpop.f32.mrf.mxu0 }
 0x17b   :  { %v1630_v52 = vpack.c.bf16 %v1598_v30, %v1598_v30  ;;  %v1341_v41 = vadd.f32 %v1340_v60, %v1207_v19  ;;  %v1472_v26 = vpop.f32.mrf.mxu2 }
 0x17d   :  { %1663 = vst.msk [vmem:[#allocation2 + $0x34] sm:$0xf] %vm1649_vm3, %v1630_v52  ;;  %v1531_v43 = vadd.f32 %v1472_v26, %v1341_v41  ;;  %v1347_v28 = vpop.f32.mrf.mxu1 }
 0x17f   :  { %v1567_v54 = vadd.f32 %v2603_v8, %v1531_v43  ;;  %v2700_v62 = vpop.f32.mrf.mxu3 }
 0x180   :  { %v1381_v14 = vadd.f32 %v2700_v62, %v2668_v20 }
 0x181   :  { %v1599_v45 = vmax.f32 %v1567_v54, 0.0 }
 0x182   :  { %v1209_v55 = vpop.f32.mrf.mxu0 }
 0x183   :  { %v1631_v42 = vpack.c.bf16 %v1599_v45, %v1599_v45  ;;  %v1343_v48 = vadd.f32 %v1342_v23, %v1209_v55  ;;  %v1474_v58 = vpop.f32.mrf.mxu2 }
 0x185   :  { %1664 = vst.msk [vmem:[#allocation2 + $0x38] sm:$0xf] %vm1649_vm3, %v1631_v42  ;;  %v1532_v15 = vadd.f32 %v1474_v58, %v1343_v48  ;;  %v1350_v18 = vpop.f32.mrf.mxu1 }
 0x187   :  { %v1568_v22 = vadd.f32 %v2603_v8, %v1532_v15  ;;  %v2704_v25 = vpop.f32.mrf.mxu3 }
 0x188   :  { %v1383_v20 = vadd.f32 %v2704_v25, %v2672_v3 }
 0x189   :  { %v1600_v1 = vmax.f32 %v1568_v22, 0.0 }
 0x18a   :  { %v1212_v31 = vpop.f32.mrf.mxu0 }
 0x18b   :  { %v1632_v35 = vpack.c.bf16 %v1600_v1, %v1600_v1  ;;  %v1346_v38 = vadd.f32 %v1345_v37, %v1212_v31  ;;  %v1477_v56 = vpop.f32.mrf.mxu2 }
 0x18d   :  { %1665 = vst.msk [vmem:[#allocation2 + $0x3c] sm:$0xf] %vm1649_vm3, %v1632_v35  ;;  %v1533_v47 = vadd.f32 %v1477_v56, %v1346_v38  ;;  %v1352_v36 = vpop.f32.mrf.mxu1 }
 0x18f   :  { %v1569_v2 = vadd.f32 %v2603_v8, %v1533_v47  ;;  %v1497_v40 = vpop.f32.mrf.mxu3 }
 0x190   :  { %v1541_v39 = vadd.f32 %v1497_v40, %v1366_v16 }
 0x191   :  { %v1601_v61 = vmax.f32 %v1569_v2, 0.0 }
 0x192   :  { %v1577_v29 = vadd.f32 %v2603_v8, %v1541_v39  ;;  %v1214_v32 = vpop.f32.mrf.mxu0 }
 0x193   :  { %v1633_v13 = vpack.c.bf16 %v1601_v61, %v1601_v61  ;;  %v1348_v60 = vadd.f32 %v1347_v28, %v1214_v32  ;;  %v1479_v27 = vpop.f32.mrf.mxu2 }
 0x194   :  { %v1609_v51 = vmax.f32 %v1577_v29, 0.0 }
 0x195   :  { %1666 = vst.msk [vmem:[#allocation2 + $0x40] sm:$0xf] %vm1649_vm3, %v1633_v13  ;;  %v1534_v9 = vadd.f32 %v1479_v27, %v1348_v60  ;;  %v1355_v55 = vpop.f32.mrf.mxu1 }
 0x196   :  { %v1641_v24 = vpack.c.bf16 %v1609_v51, %v1609_v51 }
 0x197   :  { %v1570_v6 = vadd.f32 %v2603_v8, %v1534_v9  ;;  %v1499_v33 = vpop.f32.mrf.mxu3 }
 0x198   :  { %1674 = vst.msk [vmem:[#allocation2 + $0x60] sm:$0xf] %vm1649_vm3, %v1641_v24  ;;  %v1542_v12 = vadd.f32 %v1499_v33, %v1368_v11 }
 0x199   :  { %v1602_v17 = vmax.f32 %v1570_v6, 0.0 }
 0x19a   :  { %v1578_v23 = vadd.f32 %v2603_v8, %v1542_v12  ;;  %v1217_v10 = vpop.f32.mrf.mxu0 }
 0x19b   :  { %v1634_v53 = vpack.c.bf16 %v1602_v17, %v1602_v17  ;;  %v1351_v49 = vadd.f32 %v1350_v18, %v1217_v10  ;;  %v1482_v21 = vpop.f32.mrf.mxu2 }
 0x19c   :  { %v1610_v50 = vmax.f32 %v1578_v23, 0.0 }
 0x19d   :  { %1667 = vst.msk [vmem:[#allocation2 + $0x44] sm:$0xf] %vm1649_vm3, %v1634_v53  ;;  %v1535_v4 = vadd.f32 %v1482_v21, %v1351_v49  ;;  %v1357_v7 = vpop.f32.mrf.mxu1 }
 0x19e   :  { %v1642_v59 = vpack.c.bf16 %v1610_v50, %v1610_v50 }
 0x19f   :  { %v1571_v30 = vadd.f32 %v2603_v8, %v1535_v4  ;;  %v1502_v19 = vpop.f32.mrf.mxu3 }
 0x1a0   :  { %1675 = vst.msk [vmem:[#allocation2 + $0x64] sm:$0xf] %vm1649_vm3, %v1642_v59  ;;  %v1543_v52 = vadd.f32 %v1502_v19, %v1371_v0 }
 0x1a1   :  { %v1603_v41 = vmax.f32 %v1571_v30, 0.0 }
 0x1a2   :  { %v1579_v26 = vadd.f32 %v2603_v8, %v1543_v52  ;;  %v1219_v37 = vpop.f32.mrf.mxu0 }
 0x1a3   :  { %v1635_v43 = vpack.c.bf16 %v1603_v41, %v1603_v41  ;;  %v1353_v54 = vadd.f32 %v1352_v36, %v1219_v37  ;;  %v1484_v45 = vpop.f32.mrf.mxu2 }
 0x1a4   :  { %v1611_v42 = vmax.f32 %v1579_v26, 0.0 }
 0x1a5   :  { %1668 = vst.msk [vmem:[#allocation2 + $0x48] sm:$0xf] %vm1649_vm3, %v1635_v43  ;;  %v1536_v48 = vadd.f32 %v1484_v45, %v1353_v54  ;;  %v1360_v6 = vpop.f32.mrf.mxu1 }
 0x1a6   :  { %v1643_v57 = vpack.c.bf16 %v1611_v42, %v1611_v42 }
 0x1a7   :  { %v1572_v58 = vadd.f32 %v2603_v8, %v1536_v48  ;;  %v1504_v15 = vpop.f32.mrf.mxu3 }
 0x1a8   :  { %1676 = vst.msk [vmem:[#allocation2 + $0x68] sm:$0xf] %vm1649_vm3, %v1643_v57  ;;  %v1544_v28 = vadd.f32 %v1504_v15, %v1373_v44 }
 0x1a9   :  { %v1604_v22 = vmax.f32 %v1572_v58, 0.0 }
 0x1aa   :  { %v1580_v1 = vadd.f32 %v2603_v8, %v1544_v28  ;;  %v1222_v31 = vpop.f32.mrf.mxu0 }
 0x1ab   :  { %v1636_v35 = vpack.c.bf16 %v1604_v22, %v1604_v22  ;;  %v1356_v38 = vadd.f32 %v1355_v55, %v1222_v31  ;;  %v1487_v56 = vpop.f32.mrf.mxu2 }
 0x1ac   :  { %v1612_v47 = vmax.f32 %v1580_v1, 0.0 }
 0x1ad   :  { %1669 = vst.msk [vmem:[#allocation2 + $0x4c] sm:$0xf] %vm1649_vm3, %v1636_v35  ;;  %v1537_v16 = vadd.f32 %v1487_v56, %v1356_v38  ;;  %v1362_v30 = vpop.f32.mrf.mxu1 }
 0x1ae   :  { %v1644_v2 = vpack.c.bf16 %v1612_v47, %v1612_v47 }
 0x1af   :  { %v1573_v40 = vadd.f32 %v2603_v8, %v1537_v16  ;;  %v1507_v18 = vpop.f32.mrf.mxu3 }
 0x1b0   :  { %1677 = vst.msk [vmem:[#allocation2 + $0x6c] sm:$0xf] %vm1649_vm3, %v1644_v2  ;;  %v1545_v39 = vadd.f32 %v1507_v18, %v1376_v34 }
 0x1b1   :  { %v1605_v61 = vmax.f32 %v1573_v40, 0.0 }
 0x1b2   :  { %v1581_v29 = vadd.f32 %v2603_v8, %v1545_v39  ;;  %v1224_v32 = vpop.f32.mrf.mxu0 }
 0x1b3   :  { %v1637_v13 = vpack.c.bf16 %v1605_v61, %v1605_v61  ;;  %v1358_v60 = vadd.f32 %v1357_v7, %v1224_v32  ;;  %v1489_v27 = vpop.f32.mrf.mxu2 }
 0x1b4   :  { %v1613_v51 = vmax.f32 %v1581_v29, 0.0 }
 0x1b5   :  { %1670 = vst.msk [vmem:[#allocation2 + $0x50] sm:$0xf] %vm1649_vm3, %v1637_v13  ;;  %v1538_v9 = vadd.f32 %v1489_v27, %v1358_v60 }
 0x1b6   :  { %v1645_v5 = vpack.c.bf16 %v1613_v51, %v1613_v51 }
 0x1b7   :  { %v1574_v11 = vadd.f32 %v2603_v8, %v1538_v9  ;;  %v1509_v24 = vpop.f32.mrf.mxu3 }
 0x1b8   :  { %1678 = vst.msk [vmem:[#allocation2 + $0x70] sm:$0xf] %vm1649_vm3, %v1645_v5  ;;  %v1546_v33 = vadd.f32 %v1509_v24, %v1378_v63 }
 0x1b9   :  { %v1606_v12 = vmax.f32 %v1574_v11, 0.0 }
 0x1ba   :  { %v1582_v17 = vadd.f32 %v2603_v8, %v1546_v33  ;;  %v1227_v36 = vpop.f32.mrf.mxu0 }
 0x1bb   :  { %v1638_v23 = vpack.c.bf16 %v1606_v12, %v1606_v12  ;;  %v1361_v10 = vadd.f32 %v1360_v6, %v1227_v36  ;;  %v1492_v53 = vpop.f32.mrf.mxu2 }
 0x1bc   :  { %v1614_v49 = vmax.f32 %v1582_v17, 0.0 }
 0x1bd   :  { %1671 = vst.msk [vmem:[#allocation2 + $0x54] sm:$0xf] %vm1649_vm3, %v1638_v23  ;;  %v1539_v21 = vadd.f32 %v1492_v53, %v1361_v10 }
 0x1be   :  { %v1646_v46 = vpack.c.bf16 %v1614_v49, %v1614_v49 }
 0x1bf   :  { %v1575_v50 = vadd.f32 %v2603_v8, %v1539_v21  ;;  %v1512_v4 = vpop.f32.mrf.mxu3 }
 0x1c0   :  { %1679 = vst.msk [vmem:[#allocation2 + $0x74] sm:$0xf] %vm1649_vm3, %v1646_v46  ;;  %v1547_v0 = vadd.f32 %v1512_v4, %v1381_v14 }
 0x1c1   :  { %v1607_v59 = vmax.f32 %v1575_v50, 0.0 }
 0x1c2   :  { %v1583_v19 = vadd.f32 %v2603_v8, %v1547_v0  ;;  %v1229_v52 = vpop.f32.mrf.mxu0 }
 0x1c3   :  { %v1639_v41 = vpack.c.bf16 %v1607_v59, %v1607_v59  ;;  %v1363_v26 = vadd.f32 %v1362_v30, %v1229_v52  ;;  %v1494_v37 = vpop.f32.mrf.mxu2 }
 0x1c4   :  { %v1615_v43 = vmax.f32 %v1583_v19, 0.0 }
 0x1c5   :  { %1672 = vst.msk [vmem:[#allocation2 + $0x58] sm:$0xf] %vm1649_vm3, %v1639_v41  ;;  %v1540_v54 = vadd.f32 %v1494_v37, %v1363_v26 }
 0x1c6   :  { %v1647_v62 = vpack.c.bf16 %v1615_v43, %v1615_v43 }
 0x1c7   :  { %v1576_v45 = vadd.f32 %v2603_v8, %v1540_v54  ;;  %v1514_v55 = vpop.f32.mrf.mxu3 }
 0x1c8   :  { %1680 = vst.msk [vmem:[#allocation2 + $0x78] sm:$0xf] %vm1649_vm3, %v1647_v62  ;;  %v1548_v42 = vadd.f32 %v1514_v55, %v1383_v20 }
 0x1c9   :  { %v1608_v48 = vmax.f32 %v1576_v45, 0.0 }
 0x1ca   :  { %v1584_v44 = vadd.f32 %v2603_v8, %v1548_v42 }
 0x1cb   :  { %v1640_v57 = vpack.c.bf16 %v1608_v48, %v1608_v48 }
 0x1cc   :  { %v1616_v58 = vmax.f32 %v1584_v44, 0.0 }
 0x1cd   :  { %1673 = vst.msk [vmem:[#allocation2 + $0x5c] sm:$0xf] %vm1649_vm3, %v1640_v57 }
 0x1ce   :  { %v1648_v3 = vpack.c.bf16 %v1616_v58, %v1616_v58 }
 0x1d0   :  { %1681 = vst.msk [vmem:[#allocation2 + $0x7c] sm:$0xf] %vm1649_vm3, %v1648_v3 }
 0x1d1   :  { %1694 = dma.vmem_to_hbm [thread:$0]  %s1687_s19, 2048, %s1689_s21, [#allocation3], %s1950_s22, %s1950_s22, %s1951_s23  }
 0x1d2   :  { %1946 = dma.done.wait [#allocation3], 2048  }
 0x1d3   :  { %1947 = vsyncadd [#allocation3], 4294965248 }
 0x1d4   :  { %1699 = vsyncpa [#allocation3], 1 }

</bundles_post_ra>
